<compile_context>
chip_gen: v6e
topology: v6e:2x2x1
jax: 0.10.0
libtpu: 0.0.40
codegen_flags: <defaults>
</compile_context>

<pallas_src>
import functools

import numpy as np
import jax
import jax.numpy as jnp
from jax import lax
from jax.experimental import pallas as pl
from jax.experimental.pallas import tpu as pltpu

NEG_SLOPE = 0.01     # nn.LeakyReLU default
BN_EPS = 1e-5        # nn.BatchNorm default


# ------------------------------ fused kernel -------------------------------

def _tb_fused_kernel(x_ref, b1w_ref, b1b_ref, b2w_ref, b2b_ref, b3w_ref, b3b_ref,
                     p_ref, e_ref, tile_ref, r_ref,
                     gw1_ref, gb_ref, gw2_ref, u_ref, lb_ref, lw2t_ref, s_ref,
                     o_ref, a1_ref, *, T, KT, KH, H, t_pad, slope):
    # x_ref:   (T, H, W*Ci) f32   input frames of one temporal group (also identity)
    # b1w/b3w: (W*C, W*C) bf16 block-diag 1x1 conv weights (BN folded); b1b/b3b (1, W*C)
    # b2w:     (KH*W*C, W*C) bf16 banded 3x3 weights (W reflection + BN folded, kh-major)
    # p_ref:   (W*C, C) channel selector; e_ref: (T, T*H) per-frame mean selector
    # tile_ref:(C, W*C) channel -> lane tiler; r_ref: (KH, H, H) H-reflection row shifts
    # gw1/gb/gw2, u/lb/lw2t/s: folded TAM gate parameters (tiny)
    # o_ref:   (T, H, W*C) f32 output block; a1_ref: VMEM scratch (T*H, W*C) f32

    def lrelu(v):
        return jnp.where(v >= 0, v, slope * v)

    # ---- conv1 (1x1 + folded BN + LeakyReLU) over the whole group: M = T*H ----
    xg = x_ref[...]                                        # (T, H, WCi)
    xf = xg.reshape(T * H, xg.shape[-1])
    a1 = jnp.dot(xf.astype(jnp.bfloat16), b1w_ref[...],
                 preferred_element_type=jnp.float32) + b1b_ref[...]
    a1 = lrelu(a1)
    a1_ref[...] = a1                                       # keep a1 in VMEM scratch

    # ---- TAM global average pool, entirely via matmuls (no reductions/concats) ----
    ap = jnp.dot(a1, p_ref[...], preferred_element_type=jnp.float32)      # (T*H, C)
    pooled = jnp.dot(e_ref[...], ap, preferred_element_type=jnp.float32)  # (T, C)

    # ---- TAM "G" branch: adaptive temporal kernel (softmax over KT taps) ----
    h1 = jnp.dot(gw1_ref[...], pooled, preferred_element_type=jnp.float32)
    h1 = jnp.maximum(h1 + gb_ref[...], 0.0)                               # (2T, C)
    logits = jnp.dot(gw2_ref[...], h1, preferred_element_type=jnp.float32)  # (KT, C)
    logits = logits - jnp.max(logits, axis=0, keepdims=True)
    ex = jnp.exp(logits)
    att = ex / jnp.sum(ex, axis=0, keepdims=True)                         # (KT, C)

    # ---- TAM "L" branch: per-channel sigmoid gate (temporal conv via shift mats) ----
    acc = None
    for d in range(KT):
        qd = jnp.dot(pooled, u_ref[d], preferred_element_type=jnp.float32)   # (T, C4)
        td = jnp.dot(s_ref[d], qd, preferred_element_type=jnp.float32)       # (T, C4)
        acc = td if acc is None else acc + td
    l1 = jnp.maximum(acc + lb_ref[...], 0.0)                                 # (T, C4)
    z = jnp.dot(l1, lw2t_ref[...], preferred_element_type=jnp.float32)       # (T, C)
    gate = 1.0 / (1.0 + jnp.exp(-z))

    # ---- broadcast per-channel coefficients onto the (W*C) lane layout ----
    att_w = jnp.dot(att, tile_ref[...], preferred_element_type=jnp.float32)    # (KT, WC)
    gate_w = jnp.dot(gate, tile_ref[...], preferred_element_type=jnp.float32)  # (T, WC)

    # ---- per frame: gated temporal mix -> conv2 (3x3 reflect) -> conv3 + residual ----
    for j in range(T):
        mixed = None
        for dk in range(KT):
            src = j + dk - t_pad
            if 0 <= src < T:
                cw = att_w[dk:dk + 1, :] * gate_w[src:src + 1, :]            # (1, WC)
                term = cw * a1_ref[src * H:(src + 1) * H, :]
                mixed = term if mixed is None else mixed + term

        # conv2: H reflection pad folded into (H, H) row-shift matmuls (mixed stays
        # in vregs); the KH taps folded into one K = KH*WC contraction.
        pieces = []
        for kh in range(KH):
            if kh == KH // 2:
                pieces.append(mixed)
            else:
                pieces.append(jnp.dot(r_ref[kh], mixed,
                                      preferred_element_type=jnp.float32))
        lhs = jnp.concatenate(pieces, axis=1).astype(jnp.bfloat16)           # (H, KH*WC)
        y2 = jnp.dot(lhs, b2w_ref[...], preferred_element_type=jnp.float32) + b2b_ref[...]
        y2 = lrelu(y2)

        # conv3 (1x1 + folded BN) + residual + final LeakyReLU
        y3 = jnp.dot(y2.astype(jnp.bfloat16), b3w_ref[...],
                     preferred_element_type=jnp.float32) + b3b_ref[...]
        y3 = y3 + x_ref[j]
        o_ref[j] = lrelu(y3)


# ---------------------- host-side weight preparation ----------------------

def _reflect(p, n):
    if p < 0:
        return -p
    if p >= n:
        return 2 * n - 2 - p
    return p


def _fold_bn(w, b, gamma, beta, mean, var, eps=BN_EPS):
    s = gamma / np.sqrt(var + eps)
    return w * s[:, None, None, None], (b - mean) * s + beta


def prepare_params(params, H, W, *, n_segment=3, t_kernel_size=3):
    """Fold inference BatchNorm into the convs; build lane-dense block-diagonal
    (1x1) and banded (3x3, W reflection baked in, kh-major K=KH*W*C) weights in
    bf16; H-reflection row-shift matrices; pooling / lane-tiling selectors; and
    folded TAM gate matrices oriented so the kernel only needs matmuls."""
    p = {k: np.asarray(v, np.float32) for k, v in params.items()}
    C = p['w1'].shape[0]
    C4 = p['Lw1'].shape[0]
    KH, KW = p['w2'].shape[2], p['w2'].shape[3]
    padw, padh = KW // 2, KH // 2
    T, KT = n_segment, t_kernel_size

    w1, b1 = _fold_bn(p['w1'], p['b1'], p['g1'], p['beta1'], p['m1'], p['v1'])
    w2, b2 = _fold_bn(p['w2'], p['b2'], p['g2'], p['beta2'], p['m2'], p['v2'])
    w3, b3 = _fold_bn(p['w3'], p['b3'], p['g3'], p['beta3'], p['m3'], p['v3'])

    def blockdiag(w):                      # 1x1 conv -> (W*Cin, W*Cout)
        co, ci = w.shape[0], w.shape[1]
        B = np.zeros((W * ci, W * co), np.float32)
        for x in range(W):
            B[x * ci:(x + 1) * ci, x * co:(x + 1) * co] = w[:, :, 0, 0].T
        return B

    B1, B3 = blockdiag(w1), blockdiag(w3)

    # 3x3 conv -> KH banded matrices (W reflection folded), stacked kh-major.
    B2 = np.zeros((KH, W * C, W * C), np.float32)
    for kh in range(KH):
        for x in range(W):
            for kw in range(KW):
                xs = _reflect(x + kw - padw, W)
                B2[kh, xs * C:(xs + 1) * C, x * C:(x + 1) * C] += w2[:, :, kh, kw].T
    B2f = B2.reshape(KH * W * C, W * C)

    # H-reflection row-shift matrices (one per kh tap; the center tap is identity).
    R = np.zeros((KH, H, H), np.float32)
    for kh in range(KH):
        for h in range(H):
            R[kh, h, _reflect(h + kh - padh, H)] = 1.0

    # pooling: lane->channel selector and per-frame averaging selector.
    P = np.zeros((W * C, C), np.float32)
    for x in range(W):
        for c in range(C):
            P[x * C + c, c] = 1.0
    E = np.zeros((T, T * H), np.float32)
    for j in range(T):
        E[j, j * H:(j + 1) * H] = 1.0 / (H * W)

    # channel -> (W*C) lane tiler.
    TileMat = np.zeros((C, W * C), np.float32)
    for x in range(W):
        for c in range(C):
            TileMat[c, x * C + c] = 1.0

    # TAM gate parameters, BN folded, oriented for matmul-only in-kernel math.
    gs = p['Gg'] / np.sqrt(p['Gv'] + BN_EPS)
    Gw1f = p['Gw1'] * gs[:, None]                                    # (2T, T)
    Gbf = np.tile((p['Gb'] - p['Gm'] * gs)[:, None], (1, C))         # (2T, C)
    ls = p['Lg'] / np.sqrt(p['Lv'] + BN_EPS)
    U = np.stack([p['Lw1'][:, :, d].T * ls[None, :] for d in range(KT)], 0)  # (KT,C,C4)
    Lbf = (p['Lb'] - p['Lm'] * ls)[None, :]                          # (1, C4)
    Lw2T = p['Lw2'][:, :, 0].T                                       # (C4, C)
    S = np.zeros((KT, T, T), np.float32)                             # temporal shifts
    for d in range(KT):
        for t in range(T):
            tsrc = t + d - KT // 2
            if 0 <= tsrc < T:
                S[d, t, tsrc] = 1.0

    return dict(
        B1=jnp.asarray(B1, jnp.bfloat16), b1=jnp.asarray(np.tile(b1, W)[None, :]),
        B2=jnp.asarray(B2f, jnp.bfloat16), b2=jnp.asarray(np.tile(b2, W)[None, :]),
        B3=jnp.asarray(B3, jnp.bfloat16), b3=jnp.asarray(np.tile(b3, W)[None, :]),
        P=jnp.asarray(P), E=jnp.asarray(E), TileMat=jnp.asarray(TileMat),
        R=jnp.asarray(R),
        Gw1=jnp.asarray(Gw1f), Gb=jnp.asarray(Gbf), Gw2=jnp.asarray(p['Gw2']),
        U=jnp.asarray(U), Lb=jnp.asarray(Lbf), Lw2T=jnp.asarray(Lw2T),
        S=jnp.asarray(S),
    )


# ------------------------------- forward ----------------------------------

def temporal_bottleneck_forward(x_nchw, prep, *, n_segment=3, t_kernel_size=3,
                                t_padding=1, slope=NEG_SLOPE):
    nt, Ci, H, W = x_nchw.shape
    T, KT = n_segment, t_kernel_size
    assert nt % T == 0
    nb = nt // T
    C = prep['TileMat'].shape[0]
    assert Ci == C, "residual connection requires in_channels == out_channels"
    WCi, WC = W * Ci, W * C
    KH = prep['R'].shape[0]

    # NCHW -> channels-last flattened (nt, H, W*C). TODO(synk): fold this layout
    # change into the kernel (in-kernel transpose) to save the extra HBM pass.
    x_l = jnp.transpose(x_nchw, (0, 2, 3, 1)).reshape(nt, H, WCi).astype(jnp.float32)

    def _const_spec(a):
        zeros = (0,) * a.ndim
        return pl.BlockSpec(a.shape, lambda g, _z=zeros: _z)

    const_names = ('B1', 'b1', 'B2', 'b2', 'B3', 'b3', 'P', 'E', 'TileMat', 'R',
                   'Gw1', 'Gb', 'Gw2', 'U', 'Lb', 'Lw2T', 'S')
    in_specs = [pl.BlockSpec((T, H, WCi), lambda g: (g, 0, 0))]
    in_specs += [_const_spec(prep[k]) for k in const_names]

    out_l = pl.pallas_call(
        functools.partial(_tb_fused_kernel, T=T, KT=KT, KH=KH, H=H,
                          t_pad=t_padding, slope=slope),
        out_shape=jax.ShapeDtypeStruct((nt, H, WC), jnp.float32),
        grid_spec=pltpu.PrefetchScalarGridSpec(
            num_scalar_prefetch=0, grid=(nb,),
            in_specs=in_specs,
            out_specs=pl.BlockSpec((T, H, WC), lambda g: (g, 0, 0)),
            scratch_shapes=[pltpu.VMEM((T * H, WC), jnp.float32)]),
        compiler_params=pltpu.CompilerParams(dimension_semantics=("parallel",)),
    )(x_l, *[prep[k] for k in const_names])

    return jnp.transpose(out_l.reshape(nt, H, W, C), (0, 3, 1, 2))


# --------------------------- pure-JAX reference ----------------------------

def _reference_forward(x, p, *, n_segment=3, t_kernel_size=3, t_padding=1,
                       slope=NEG_SLOPE, eps=BN_EPS):
    x = x.astype(jnp.float32)

    def conv2d(inp, w, b, reflect_pad=0):
        if reflect_pad:
            inp = jnp.pad(inp, ((0, 0), (0, 0), (reflect_pad, reflect_pad),
                                (reflect_pad, reflect_pad)), mode='reflect')
        y = lax.conv_general_dilated(inp, w, (1, 1), 'VALID',
                                     dimension_numbers=("NCHW", "OIHW", "NCHW"),
                                     precision=lax.Precision.HIGHEST)
        return y + b.reshape(1, -1, 1, 1)

    def bn2d(y, g, b, m, v):
        return (y - m.reshape(1, -1, 1, 1)) / jnp.sqrt(v.reshape(1, -1, 1, 1) + eps) \
               * g.reshape(1, -1, 1, 1) + b.reshape(1, -1, 1, 1)

    def lrelu(y):
        return jnp.where(y >= 0, y, slope * y)

    a1 = lrelu(bn2d(conv2d(x, p['w1'], p['b1']), p['g1'], p['beta1'], p['m1'], p['v1']))

    nt, C, H, W = a1.shape
    T, KT = n_segment, t_kernel_size
    nb = nt // T
    newx = jnp.transpose(a1.reshape(nb, T, C, H, W), (0, 2, 1, 3, 4))   # (nb,C,T,H,W)
    pooled = newx.mean(axis=(3, 4))                                      # (nb,C,T)
    rows = pooled.reshape(nb * C, T)
    h1 = rows @ p['Gw1'].T
    h1 = (h1 - p['Gm']) / jnp.sqrt(p['Gv'] + eps) * p['Gg'] + p['Gb']
    h1 = jnp.maximum(h1, 0.0)
    att = jax.nn.softmax(h1 @ p['Gw2'].T, axis=-1).reshape(nb, C, KT)
    xpad = jnp.pad(pooled, ((0, 0), (0, 0), (KT // 2, KT // 2)))
    win = jnp.stack([xpad[:, :, d:d + T] for d in range(KT)], axis=-1)
    l1 = jnp.einsum('gctd,ocd->got', win, p['Lw1'])
    l1 = (l1 - p['Lm'][None, :, None]) / jnp.sqrt(p['Lv'][None, :, None] + eps) \
         * p['Lg'][None, :, None] + p['Lb'][None, :, None]
    l1 = jnp.maximum(l1, 0.0)
    gate = jax.nn.sigmoid(jnp.einsum('got,co->gct', l1, p['Lw2'][:, :, 0]))
    gx = newx * gate[:, :, :, None, None]
    gxp = jnp.pad(gx, ((0, 0), (0, 0), (t_padding, t_padding), (0, 0), (0, 0)))
    tout = sum(att[:, :, dk][:, :, None, None, None] * gxp[:, :, dk:dk + T]
               for dk in range(KT))
    a_tam = jnp.transpose(tout, (0, 2, 1, 3, 4)).reshape(nt, C, H, W)

    a2 = lrelu(bn2d(conv2d(a_tam, p['w2'], p['b2'], reflect_pad=1),
                    p['g2'], p['beta2'], p['m2'], p['v2']))
    a3 = bn2d(conv2d(a2, p['w3'], p['b3']), p['g3'], p['beta3'], p['m3'], p['v3'])
    return lrelu(a3 + x)


# ---------------------------------- main -----------------------------------

if __name__ == "__main__":
    T, KT = 3, 3                  # n_segment, temporal kernel size
    nb = 2
    nt = nb * T                   # 6 frames
    C = 8                         # in_channels == out_channels
    H = W = 16
    C4 = C // 4

    keys = iter(jax.random.split(jax.random.PRNGKey(0), 40))

    def nrm(shape, scale=1.0):
        return scale * jax.random.normal(next(keys), shape, dtype=jnp.float32)

    params = {}

    def add_conv_bn(name, co, ci, k, wscale):
        params['w' + name] = nrm((co, ci, k, k), wscale)
        params['b' + name] = nrm((co,), 0.1)
        params['g' + name] = 1.0 + nrm((co,), 0.1)
        params['beta' + name] = nrm((co,), 0.1)
        params['m' + name] = nrm((co,), 0.1)
        params['v' + name] = 1.0 + 0.1 * jnp.abs(nrm((co,)))

    add_conv_bn('1', C, C, 1, 0.2)
    add_conv_bn('2', C, C, 3, 0.1)
    add_conv_bn('3', C, C, 1, 0.2)
    params.update(
        Gw1=nrm((2 * T, T), 0.5), Gw2=nrm((KT, 2 * T), 0.5),
        Gg=1.0 + nrm((2 * T,), 0.1), Gb=nrm((2 * T,), 0.1),
        Gm=nrm((2 * T,), 0.1), Gv=1.0 + 0.1 * jnp.abs(nrm((2 * T,))),
        Lw1=nrm((C4, C, KT), 0.3), Lw2=nrm((C, C4, 1), 0.5),
        Lg=1.0 + nrm((C4,), 0.1), Lb=nrm((C4,), 0.1),
        Lm=nrm((C4,), 0.1), Lv=1.0 + 0.1 * jnp.abs(nrm((C4,))),
    )
    x = nrm((nt, C, H, W), 1.0)

    prep = prepare_params(params, H, W, n_segment=T, t_kernel_size=KT)
    out = temporal_bottleneck_forward(x, prep, n_segment=T, t_kernel_size=KT,
                                      t_padding=1)
    out = jax.block_until_ready(out)

    ref = jax.block_until_ready(
        _reference_forward(x, params, n_segment=T, t_kernel_size=KT, t_padding=1))

    assert out.shape == (nt, C, H, W)
    err = float(jnp.max(jnp.abs(out - ref)))
    assert err < 5e-2, f"max abs err {err}"   # bf16 MXU operands, fp32 accumulation

    print("KERNEL_OK")
</pallas_src>

<mosaic_0001>
module attributes {stable_mosaic.version = 11 : i64} {
  func.func @_tb_fused_kernel(%arg0: i32, %arg1: memref<3x16x128xf32, #tpu.memory_space<vmem>>, %arg2: memref<128x128xbf16, #tpu.memory_space<vmem>>, %arg3: memref<1x128xf32, #tpu.memory_space<vmem>>, %arg4: memref<384x128xbf16, #tpu.memory_space<vmem>>, %arg5: memref<1x128xf32, #tpu.memory_space<vmem>>, %arg6: memref<128x128xbf16, #tpu.memory_space<vmem>>, %arg7: memref<1x128xf32, #tpu.memory_space<vmem>>, %arg8: memref<128x8xf32, #tpu.memory_space<vmem>>, %arg9: memref<3x48xf32, #tpu.memory_space<vmem>>, %arg10: memref<8x128xf32, #tpu.memory_space<vmem>>, %arg11: memref<3x16x16xf32, #tpu.memory_space<vmem>>, %arg12: memref<6x3xf32, #tpu.memory_space<vmem>>, %arg13: memref<6x8xf32, #tpu.memory_space<vmem>>, %arg14: memref<3x6xf32, #tpu.memory_space<vmem>>, %arg15: memref<3x8x2xf32, #tpu.memory_space<vmem>>, %arg16: memref<1x2xf32, #tpu.memory_space<vmem>>, %arg17: memref<2x8xf32, #tpu.memory_space<vmem>>, %arg18: memref<3x3x3xf32, #tpu.memory_space<vmem>>, %arg19: memref<3x16x128xf32, #tpu.memory_space<vmem>>, %arg20: memref<48x128xf32, #tpu.memory_space<vmem>>) attributes {dimension_semantics = [#tpu.dimension_semantics<parallel>], iteration_bounds = array<i64: 2>, scalar_prefetch = 0 : i64, scratch_operands = 1 : i64, tpu.core_type = #tpu.core_type<tc>, window_params = [{transform_indices = @transform_0, window_bounds = array<i64: 3, 16, 128>}, {pipeline_mode = #tpu.pipeline_mode<synchronous>, transform_indices = @transform_1, window_bounds = array<i64: 128, 128>}, {pipeline_mode = #tpu.pipeline_mode<synchronous>, transform_indices = @transform_2, window_bounds = array<i64: 1, 128>}, {pipeline_mode = #tpu.pipeline_mode<synchronous>, transform_indices = @transform_3, window_bounds = array<i64: 384, 128>}, {pipeline_mode = #tpu.pipeline_mode<synchronous>, transform_indices = @transform_4, window_bounds = array<i64: 1, 128>}, {pipeline_mode = #tpu.pipeline_mode<synchronous>, transform_indices = @transform_5, window_bounds = array<i64: 128, 128>}, {pipeline_mode = #tpu.pipeline_mode<synchronous>, transform_indices = @transform_6, window_bounds = array<i64: 1, 128>}, {pipeline_mode = #tpu.pipeline_mode<synchronous>, transform_indices = @transform_7, window_bounds = array<i64: 128, 8>}, {pipeline_mode = #tpu.pipeline_mode<synchronous>, transform_indices = @transform_8, window_bounds = array<i64: 3, 48>}, {pipeline_mode = #tpu.pipeline_mode<synchronous>, transform_indices = @transform_9, window_bounds = array<i64: 8, 128>}, {pipeline_mode = #tpu.pipeline_mode<synchronous>, transform_indices = @transform_10, window_bounds = array<i64: 3, 16, 16>}, {pipeline_mode = #tpu.pipeline_mode<synchronous>, transform_indices = @transform_11, window_bounds = array<i64: 6, 3>}, {pipeline_mode = #tpu.pipeline_mode<synchronous>, transform_indices = @transform_12, window_bounds = array<i64: 6, 8>}, {pipeline_mode = #tpu.pipeline_mode<synchronous>, transform_indices = @transform_13, window_bounds = array<i64: 3, 6>}, {pipeline_mode = #tpu.pipeline_mode<synchronous>, transform_indices = @transform_14, window_bounds = array<i64: 3, 8, 2>}, {pipeline_mode = #tpu.pipeline_mode<synchronous>, transform_indices = @transform_15, window_bounds = array<i64: 1, 2>}, {pipeline_mode = #tpu.pipeline_mode<synchronous>, transform_indices = @transform_16, window_bounds = array<i64: 2, 8>}, {pipeline_mode = #tpu.pipeline_mode<synchronous>, transform_indices = @transform_17, window_bounds = array<i64: 3, 3, 3>}, {transform_indices = @transform_18, window_bounds = array<i64: 3, 16, 128>}]} {
    %c0 = arith.constant 0 : index
    %c0_0 = arith.constant 0 : index
    %c0_1 = arith.constant 0 : index
    %0 = vector.load %arg1[%c0, %c0_0, %c0_1] : memref<3x16x128xf32, #tpu.memory_space<vmem>>, vector<3x16x128xf32>
    %1 = vector.shape_cast %0 : vector<3x16x128xf32> to vector<48x128xf32>
    %2 = arith.truncf %1 : vector<48x128xf32> to vector<48x128xbf16>
    %c0_2 = arith.constant 0 : index
    %c0_3 = arith.constant 0 : index
    %3 = vector.load %arg2[%c0_2, %c0_3] : memref<128x128xbf16, #tpu.memory_space<vmem>>, vector<128x128xbf16>
    %cst = arith.constant dense<0.000000e+00> : vector<48x128xf32>
    %4 = tpu.matmul %2, %3, %cst {dimension_numbers = #tpu.dot_dimension_numbers<[1], [0], [0], [1], [0, 0, 1, 1], [], []>} : vector<48x128xbf16>, vector<128x128xbf16>, vector<48x128xf32> -> vector<48x128xf32>
    %c0_4 = arith.constant 0 : index
    %c0_5 = arith.constant 0 : index
    %5 = vector.load %arg3[%c0_4, %c0_5] : memref<1x128xf32, #tpu.memory_space<vmem>>, vector<1x128xf32>
    %6 = vector.broadcast %5 : vector<1x128xf32> to vector<48x128xf32>
    %7 = arith.addf %4, %6 : vector<48x128xf32>
    %cst_6 = arith.constant 0.000000e+00 : f32
    %8 = vector.broadcast %cst_6 : f32 to vector<48x128xf32>
    %9 = arith.cmpf oge, %7, %8 : vector<48x128xf32>
    %cst_7 = arith.constant 0.00999999977 : f32
    %10 = vector.broadcast %cst_7 : f32 to vector<48x128xf32>
    %11 = arith.mulf %10, %7 : vector<48x128xf32>
    %12 = arith.select %9, %7, %11 : vector<48x128xi1>, vector<48x128xf32>
    %c0_8 = arith.constant 0 : index
    %c0_9 = arith.constant 0 : index
    %13 = vector.load %arg20[%c0_8, %c0_9] : memref<48x128xf32, #tpu.memory_space<vmem>>, vector<48x128xf32>
    tpu.vector_store %arg20[%c0_8, %c0_9], %12 {strides = array<i32>} : memref<48x128xf32, #tpu.memory_space<vmem>>, vector<48x128xf32>,
    %c0_10 = arith.constant 0 : index
    %c0_11 = arith.constant 0 : index
    %14 = vector.load %arg8[%c0_10, %c0_11] : memref<128x8xf32, #tpu.memory_space<vmem>>, vector<128x8xf32>
    %cst_12 = arith.constant dense<0.000000e+00> : vector<48x8xf32>
    %15 = tpu.matmul %12, %14, %cst_12 {dimension_numbers = #tpu.dot_dimension_numbers<[1], [0], [0], [1], [0, 0, 1, 1], [], []>} : vector<48x128xf32>, vector<128x8xf32>, vector<48x8xf32> -> vector<48x8xf32>
    %c0_13 = arith.constant 0 : index
    %c0_14 = arith.constant 0 : index
    %16 = vector.load %arg9[%c0_13, %c0_14] : memref<3x48xf32, #tpu.memory_space<vmem>>, vector<3x48xf32>
    %cst_15 = arith.constant dense<0.000000e+00> : vector<3x8xf32>
    %17 = tpu.matmul %16, %15, %cst_15 {dimension_numbers = #tpu.dot_dimension_numbers<[1], [0], [0], [1], [0, 0, 1, 1], [], []>} : vector<3x48xf32>, vector<48x8xf32>, vector<3x8xf32> -> vector<3x8xf32>
    %c0_16 = arith.constant 0 : index
    %c0_17 = arith.constant 0 : index
    %18 = vector.load %arg12[%c0_16, %c0_17] : memref<6x3xf32, #tpu.memory_space<vmem>>, vector<6x3xf32>
    %cst_18 = arith.constant dense<0.000000e+00> : vector<6x8xf32>
    %19 = tpu.matmul %18, %17, %cst_18 {dimension_numbers = #tpu.dot_dimension_numbers<[1], [0], [0], [1], [0, 0, 1, 1], [], []>} : vector<6x3xf32>, vector<3x8xf32>, vector<6x8xf32> -> vector<6x8xf32>
    %c0_19 = arith.constant 0 : index
    %c0_20 = arith.constant 0 : index
    %20 = vector.load %arg13[%c0_19, %c0_20] : memref<6x8xf32, #tpu.memory_space<vmem>>, vector<6x8xf32>
    %21 = arith.addf %19, %20 : vector<6x8xf32>
    %cst_21 = arith.constant 0.000000e+00 : f32
    %22 = vector.broadcast %cst_21 : f32 to vector<6x8xf32>
    %23 = arith.maximumf %21, %22 : vector<6x8xf32>
    %c0_22 = arith.constant 0 : index
    %c0_23 = arith.constant 0 : index
    %24 = vector.load %arg14[%c0_22, %c0_23] : memref<3x6xf32, #tpu.memory_space<vmem>>, vector<3x6xf32>
    %cst_24 = arith.constant dense<0.000000e+00> : vector<3x8xf32>
    %25 = tpu.matmul %24, %23, %cst_24 {dimension_numbers = #tpu.dot_dimension_numbers<[1], [0], [0], [1], [0, 0, 1, 1], [], []>} : vector<3x6xf32>, vector<6x8xf32>, vector<3x8xf32> -> vector<3x8xf32>
    %cst_25 = arith.constant dense<0xFF800000> : vector<8xf32>
    %26 = vector.multi_reduction <maximumf>, %25, %cst_25 [0] : vector<3x8xf32> to vector<8xf32>
    %27 = vector.shape_cast %26 : vector<8xf32> to vector<1x8xf32>
    %28 = vector.broadcast %27 : vector<1x8xf32> to vector<3x8xf32>
    %29 = arith.subf %25, %28 : vector<3x8xf32>
    %30 = math.exp %29 : vector<3x8xf32>
    %cst_26 = arith.constant dense<0.000000e+00> : vector<8xf32>
    %31 = vector.multi_reduction <add>, %30, %cst_26 [0] : vector<3x8xf32> to vector<8xf32>
    %32 = vector.shape_cast %31 : vector<8xf32> to vector<1x8xf32>
    %33 = vector.broadcast %32 : vector<1x8xf32> to vector<3x8xf32>
    %34 = arith.divf %30, %33 : vector<3x8xf32>
    %c0_27 = arith.constant 0 : index
    %c0_28 = arith.constant 0 : index
    %c0_29 = arith.constant 0 : index
    %35 = vector.load %arg15[%c0_27, %c0_28, %c0_29] : memref<3x8x2xf32, #tpu.memory_space<vmem>>, vector<1x8x2xf32>
    %36 = vector.shape_cast %35 : vector<1x8x2xf32> to vector<8x2xf32>
    %cst_30 = arith.constant dense<0.000000e+00> : vector<3x2xf32>
    %37 = tpu.matmul %17, %36, %cst_30 {dimension_numbers = #tpu.dot_dimension_numbers<[1], [0], [0], [1], [0, 0, 1, 1], [], []>} : vector<3x8xf32>, vector<8x2xf32>, vector<3x2xf32> -> vector<3x2xf32>
    %c0_31 = arith.constant 0 : index
    %c0_32 = arith.constant 0 : index
    %c0_33 = arith.constant 0 : index
    %38 = vector.load %arg18[%c0_31, %c0_32, %c0_33] : memref<3x3x3xf32, #tpu.memory_space<vmem>>, vector<1x3x3xf32>
    %39 = vector.shape_cast %38 : vector<1x3x3xf32> to vector<3x3xf32>
    %cst_34 = arith.constant dense<0.000000e+00> : vector<3x2xf32>
    %40 = tpu.matmul %39, %37, %cst_34 {dimension_numbers = #tpu.dot_dimension_numbers<[1], [0], [0], [1], [0, 0, 1, 1], [], []>} : vector<3x3xf32>, vector<3x2xf32>, vector<3x2xf32> -> vector<3x2xf32>
    %c1 = arith.constant 1 : index
    %c0_35 = arith.constant 0 : index
    %c0_36 = arith.constant 0 : index
    %41 = vector.load %arg15[%c1, %c0_35, %c0_36] : memref<3x8x2xf32, #tpu.memory_space<vmem>>, vector<1x8x2xf32>
    %42 = vector.shape_cast %41 : vector<1x8x2xf32> to vector<8x2xf32>
    %cst_37 = arith.constant dense<0.000000e+00> : vector<3x2xf32>
    %43 = tpu.matmul %17, %42, %cst_37 {dimension_numbers = #tpu.dot_dimension_numbers<[1], [0], [0], [1], [0, 0, 1, 1], [], []>} : vector<3x8xf32>, vector<8x2xf32>, vector<3x2xf32> -> vector<3x2xf32>
    %c1_38 = arith.constant 1 : index
    %c0_39 = arith.constant 0 : index
    %c0_40 = arith.constant 0 : index
    %44 = vector.load %arg18[%c1_38, %c0_39, %c0_40] : memref<3x3x3xf32, #tpu.memory_space<vmem>>, vector<1x3x3xf32>
    %45 = vector.shape_cast %44 : vector<1x3x3xf32> to vector<3x3xf32>
    %cst_41 = arith.constant dense<0.000000e+00> : vector<3x2xf32>
    %46 = tpu.matmul %45, %43, %cst_41 {dimension_numbers = #tpu.dot_dimension_numbers<[1], [0], [0], [1], [0, 0, 1, 1], [], []>} : vector<3x3xf32>, vector<3x2xf32>, vector<3x2xf32> -> vector<3x2xf32>
    %47 = arith.addf %40, %46 : vector<3x2xf32>
    %c2 = arith.constant 2 : index
    %c0_42 = arith.constant 0 : index
    %c0_43 = arith.constant 0 : index
    %48 = vector.load %arg15[%c2, %c0_42, %c0_43] : memref<3x8x2xf32, #tpu.memory_space<vmem>>, vector<1x8x2xf32>
    %49 = vector.shape_cast %48 : vector<1x8x2xf32> to vector<8x2xf32>
    %cst_44 = arith.constant dense<0.000000e+00> : vector<3x2xf32>
    %50 = tpu.matmul %17, %49, %cst_44 {dimension_numbers = #tpu.dot_dimension_numbers<[1], [0], [0], [1], [0, 0, 1, 1], [], []>} : vector<3x8xf32>, vector<8x2xf32>, vector<3x2xf32> -> vector<3x2xf32>
    %c2_45 = arith.constant 2 : index
    %c0_46 = arith.constant 0 : index
    %c0_47 = arith.constant 0 : index
    %51 = vector.load %arg18[%c2_45, %c0_46, %c0_47] : memref<3x3x3xf32, #tpu.memory_space<vmem>>, vector<1x3x3xf32>
    %52 = vector.shape_cast %51 : vector<1x3x3xf32> to vector<3x3xf32>
    %cst_48 = arith.constant dense<0.000000e+00> : vector<3x2xf32>
    %53 = tpu.matmul %52, %50, %cst_48 {dimension_numbers = #tpu.dot_dimension_numbers<[1], [0], [0], [1], [0, 0, 1, 1], [], []>} : vector<3x3xf32>, vector<3x2xf32>, vector<3x2xf32> -> vector<3x2xf32>
    %54 = arith.addf %47, %53 : vector<3x2xf32>
    %c0_49 = arith.constant 0 : index
    %c0_50 = arith.constant 0 : index
    %55 = vector.load %arg16[%c0_49, %c0_50] : memref<1x2xf32, #tpu.memory_space<vmem>>, vector<1x2xf32>
    %56 = vector.broadcast %55 : vector<1x2xf32> to vector<3x2xf32>
    %57 = arith.addf %54, %56 : vector<3x2xf32>
    %cst_51 = arith.constant 0.000000e+00 : f32
    %58 = vector.broadcast %cst_51 : f32 to vector<3x2xf32>
    %59 = arith.maximumf %57, %58 : vector<3x2xf32>
    %c0_52 = arith.constant 0 : index
    %c0_53 = arith.constant 0 : index
    %60 = vector.load %arg17[%c0_52, %c0_53] : memref<2x8xf32, #tpu.memory_space<vmem>>, vector<2x8xf32>
    %cst_54 = arith.constant dense<0.000000e+00> : vector<3x8xf32>
    %61 = tpu.matmul %59, %60, %cst_54 {dimension_numbers = #tpu.dot_dimension_numbers<[1], [0], [0], [1], [0, 0, 1, 1], [], []>} : vector<3x2xf32>, vector<2x8xf32>, vector<3x8xf32> -> vector<3x8xf32>
    %cst_55 = arith.constant 0.000000e+00 : f32
    %62 = vector.broadcast %cst_55 : f32 to vector<3x8xf32>
    %63 = arith.subf %62, %61 : vector<3x8xf32>
    %64 = math.exp %63 : vector<3x8xf32>
    %cst_56 = arith.constant 1.000000e+00 : f32
    %65 = vector.broadcast %cst_56 : f32 to vector<3x8xf32>
    %66 = arith.addf %65, %64 : vector<3x8xf32>
    %cst_57 = arith.constant 1.000000e+00 : f32
    %67 = vector.broadcast %cst_57 : f32 to vector<3x8xf32>
    %68 = arith.divf %67, %66 : vector<3x8xf32>
    %c0_58 = arith.constant 0 : index
    %c0_59 = arith.constant 0 : index
    %69 = vector.load %arg10[%c0_58, %c0_59] : memref<8x128xf32, #tpu.memory_space<vmem>>, vector<8x128xf32>
    %cst_60 = arith.constant dense<0.000000e+00> : vector<3x128xf32>
    %70 = tpu.matmul %34, %69, %cst_60 {dimension_numbers = #tpu.dot_dimension_numbers<[1], [0], [0], [1], [0, 0, 1, 1], [], []>} : vector<3x8xf32>, vector<8x128xf32>, vector<3x128xf32> -> vector<3x128xf32>
    %c0_61 = arith.constant 0 : index
    %c0_62 = arith.constant 0 : index
    %71 = vector.load %arg10[%c0_61, %c0_62] : memref<8x128xf32, #tpu.memory_space<vmem>>, vector<8x128xf32>
    %cst_63 = arith.constant dense<0.000000e+00> : vector<3x128xf32>
    %72 = tpu.matmul %68, %71, %cst_63 {dimension_numbers = #tpu.dot_dimension_numbers<[1], [0], [0], [1], [0, 0, 1, 1], [], []>} : vector<3x8xf32>, vector<8x128xf32>, vector<3x128xf32> -> vector<3x128xf32>
    %73 = vector.extract_strided_slice %70 {offsets = [1, 0], sizes = [1, 128], strides = [1, 1]} : vector<3x128xf32> to vector<1x128xf32>
    %74 = vector.extract_strided_slice %72 {offsets = [0, 0], sizes = [1, 128], strides = [1, 1]} : vector<3x128xf32> to vector<1x128xf32>
    %75 = arith.mulf %73, %74 : vector<1x128xf32>
    %c0_64 = arith.constant 0 : index
    %c0_65 = arith.constant 0 : index
    %76 = vector.load %arg20[%c0_64, %c0_65] : memref<48x128xf32, #tpu.memory_space<vmem>>, vector<16x128xf32>
    %77 = vector.broadcast %75 : vector<1x128xf32> to vector<16x128xf32>
    %78 = arith.mulf %77, %76 : vector<16x128xf32>
    %79 = vector.extract_strided_slice %70 {offsets = [2, 0], sizes = [1, 128], strides = [1, 1]} : vector<3x128xf32> to vector<1x128xf32>
    %80 = vector.extract_strided_slice %72 {offsets = [1, 0], sizes = [1, 128], strides = [1, 1]} : vector<3x128xf32> to vector<1x128xf32>
    %81 = arith.mulf %79, %80 : vector<1x128xf32>
    %c16 = arith.constant 16 : index
    %c0_66 = arith.constant 0 : index
    %82 = vector.load %arg20[%c16, %c0_66] : memref<48x128xf32, #tpu.memory_space<vmem>>, vector<16x128xf32>
    %83 = vector.broadcast %81 : vector<1x128xf32> to vector<16x128xf32>
    %84 = arith.mulf %83, %82 : vector<16x128xf32>
    %85 = arith.addf %78, %84 : vector<16x128xf32>
    %c0_67 = arith.constant 0 : index
    %c0_68 = arith.constant 0 : index
    %c0_69 = arith.constant 0 : index
    %86 = vector.load %arg11[%c0_67, %c0_68, %c0_69] : memref<3x16x16xf32, #tpu.memory_space<vmem>>, vector<1x16x16xf32>
    %87 = vector.shape_cast %86 : vector<1x16x16xf32> to vector<16x16xf32>
    %cst_70 = arith.constant dense<0.000000e+00> : vector<16x128xf32>
    %88 = tpu.matmul %87, %85, %cst_70 {dimension_numbers = #tpu.dot_dimension_numbers<[1], [0], [0], [1], [0, 0, 1, 1], [], []>} : vector<16x16xf32>, vector<16x128xf32>, vector<16x128xf32> -> vector<16x128xf32>
    %c2_71 = arith.constant 2 : index
    %c0_72 = arith.constant 0 : index
    %c0_73 = arith.constant 0 : index
    %89 = vector.load %arg11[%c2_71, %c0_72, %c0_73] : memref<3x16x16xf32, #tpu.memory_space<vmem>>, vector<1x16x16xf32>
    %90 = vector.shape_cast %89 : vector<1x16x16xf32> to vector<16x16xf32>
    %cst_74 = arith.constant dense<0.000000e+00> : vector<16x128xf32>
    %91 = tpu.matmul %90, %85, %cst_74 {dimension_numbers = #tpu.dot_dimension_numbers<[1], [0], [0], [1], [0, 0, 1, 1], [], []>} : vector<16x16xf32>, vector<16x128xf32>, vector<16x128xf32> -> vector<16x128xf32>
    %92 = tpu.concatenate %88, %85, %91 in 1 : vector<16x128xf32>, vector<16x128xf32>, vector<16x128xf32> -> vector<16x384xf32>
    %93 = arith.truncf %92 : vector<16x384xf32> to vector<16x384xbf16>
    %c0_75 = arith.constant 0 : index
    %c0_76 = arith.constant 0 : index
    %94 = vector.load %arg4[%c0_75, %c0_76] : memref<384x128xbf16, #tpu.memory_space<vmem>>, vector<384x128xbf16>
    %cst_77 = arith.constant dense<0.000000e+00> : vector<16x128xf32>
    %95 = tpu.matmul %93, %94, %cst_77 {dimension_numbers = #tpu.dot_dimension_numbers<[1], [0], [0], [1], [0, 0, 1, 1], [], []>} : vector<16x384xbf16>, vector<384x128xbf16>, vector<16x128xf32> -> vector<16x128xf32>
    %c0_78 = arith.constant 0 : index
    %c0_79 = arith.constant 0 : index
    %96 = vector.load %arg5[%c0_78, %c0_79] : memref<1x128xf32, #tpu.memory_space<vmem>>, vector<1x128xf32>
    %97 = vector.broadcast %96 : vector<1x128xf32> to vector<16x128xf32>
    %98 = arith.addf %95, %97 : vector<16x128xf32>
    %cst_80 = arith.constant 0.000000e+00 : f32
    %99 = vector.broadcast %cst_80 : f32 to vector<16x128xf32>
    %100 = arith.cmpf oge, %98, %99 : vector<16x128xf32>
    %cst_81 = arith.constant 0.00999999977 : f32
    %101 = vector.broadcast %cst_81 : f32 to vector<16x128xf32>
    %102 = arith.mulf %101, %98 : vector<16x128xf32>
    %103 = arith.select %100, %98, %102 : vector<16x128xi1>, vector<16x128xf32>
    %104 = arith.truncf %103 : vector<16x128xf32> to vector<16x128xbf16>
    %c0_82 = arith.constant 0 : index
    %c0_83 = arith.constant 0 : index
    %105 = vector.load %arg6[%c0_82, %c0_83] : memref<128x128xbf16, #tpu.memory_space<vmem>>, vector<128x128xbf16>
    %cst_84 = arith.constant dense<0.000000e+00> : vector<16x128xf32>
    %106 = tpu.matmul %104, %105, %cst_84 {dimension_numbers = #tpu.dot_dimension_numbers<[1], [0], [0], [1], [0, 0, 1, 1], [], []>} : vector<16x128xbf16>, vector<128x128xbf16>, vector<16x128xf32> -> vector<16x128xf32>
    %c0_85 = arith.constant 0 : index
    %c0_86 = arith.constant 0 : index
    %107 = vector.load %arg7[%c0_85, %c0_86] : memref<1x128xf32, #tpu.memory_space<vmem>>, vector<1x128xf32>
    %108 = vector.broadcast %107 : vector<1x128xf32> to vector<16x128xf32>
    %109 = arith.addf %106, %108 : vector<16x128xf32>
    %c0_87 = arith.constant 0 : index
    %c0_88 = arith.constant 0 : index
    %c0_89 = arith.constant 0 : index
    %110 = vector.load %arg1[%c0_87, %c0_88, %c0_89] : memref<3x16x128xf32, #tpu.memory_space<vmem>>, vector<1x16x128xf32>
    %111 = vector.shape_cast %110 : vector<1x16x128xf32> to vector<16x128xf32>
    %112 = arith.addf %109, %111 : vector<16x128xf32>
    %cst_90 = arith.constant 0.000000e+00 : f32
    %113 = vector.broadcast %cst_90 : f32 to vector<16x128xf32>
    %114 = arith.cmpf oge, %112, %113 : vector<16x128xf32>
    %cst_91 = arith.constant 0.00999999977 : f32
    %115 = vector.broadcast %cst_91 : f32 to vector<16x128xf32>
    %116 = arith.mulf %115, %112 : vector<16x128xf32>
    %117 = arith.select %114, %112, %116 : vector<16x128xi1>, vector<16x128xf32>
    %c0_92 = arith.constant 0 : index
    %c0_93 = arith.constant 0 : index
    %c0_94 = arith.constant 0 : index
    %118 = vector.load %arg19[%c0_92, %c0_93, %c0_94] : memref<3x16x128xf32, #tpu.memory_space<vmem>>, vector<1x16x128xf32>
    %119 = vector.shape_cast %118 : vector<1x16x128xf32> to vector<16x128xf32>
    %120 = vector.shape_cast %117 : vector<16x128xf32> to vector<1x16x128xf32>
    tpu.vector_store %arg19[%c0_92, %c0_93, %c0_94], %120 {strides = array<i32>} : memref<3x16x128xf32, #tpu.memory_space<vmem>>, vector<1x16x128xf32>,
    %121 = vector.extract_strided_slice %70 {offsets = [0, 0], sizes = [1, 128], strides = [1, 1]} : vector<3x128xf32> to vector<1x128xf32>
    %122 = vector.extract_strided_slice %72 {offsets = [0, 0], sizes = [1, 128], strides = [1, 1]} : vector<3x128xf32> to vector<1x128xf32>
    %123 = arith.mulf %121, %122 : vector<1x128xf32>
    %c0_95 = arith.constant 0 : index
    %c0_96 = arith.constant 0 : index
    %124 = vector.load %arg20[%c0_95, %c0_96] : memref<48x128xf32, #tpu.memory_space<vmem>>, vector<16x128xf32>
    %125 = vector.broadcast %123 : vector<1x128xf32> to vector<16x128xf32>
    %126 = arith.mulf %125, %124 : vector<16x128xf32>
    %127 = vector.extract_strided_slice %70 {offsets = [1, 0], sizes = [1, 128], strides = [1, 1]} : vector<3x128xf32> to vector<1x128xf32>
    %128 = vector.extract_strided_slice %72 {offsets = [1, 0], sizes = [1, 128], strides = [1, 1]} : vector<3x128xf32> to vector<1x128xf32>
    %129 = arith.mulf %127, %128 : vector<1x128xf32>
    %c16_97 = arith.constant 16 : index
    %c0_98 = arith.constant 0 : index
    %130 = vector.load %arg20[%c16_97, %c0_98] : memref<48x128xf32, #tpu.memory_space<vmem>>, vector<16x128xf32>
    %131 = vector.broadcast %129 : vector<1x128xf32> to vector<16x128xf32>
    %132 = arith.mulf %131, %130 : vector<16x128xf32>
    %133 = arith.addf %126, %132 : vector<16x128xf32>
    %134 = vector.extract_strided_slice %70 {offsets = [2, 0], sizes = [1, 128], strides = [1, 1]} : vector<3x128xf32> to vector<1x128xf32>
    %135 = vector.extract_strided_slice %72 {offsets = [2, 0], sizes = [1, 128], strides = [1, 1]} : vector<3x128xf32> to vector<1x128xf32>
    %136 = arith.mulf %134, %135 : vector<1x128xf32>
    %c32 = arith.constant 32 : index
    %c0_99 = arith.constant 0 : index
    %137 = vector.load %arg20[%c32, %c0_99] : memref<48x128xf32, #tpu.memory_space<vmem>>, vector<16x128xf32>
    %138 = vector.broadcast %136 : vector<1x128xf32> to vector<16x128xf32>
    %139 = arith.mulf %138, %137 : vector<16x128xf32>
    %140 = arith.addf %133, %139 : vector<16x128xf32>
    %c0_100 = arith.constant 0 : index
    %c0_101 = arith.constant 0 : index
    %c0_102 = arith.constant 0 : index
    %141 = vector.load %arg11[%c0_100, %c0_101, %c0_102] : memref<3x16x16xf32, #tpu.memory_space<vmem>>, vector<1x16x16xf32>
    %142 = vector.shape_cast %141 : vector<1x16x16xf32> to vector<16x16xf32>
    %cst_103 = arith.constant dense<0.000000e+00> : vector<16x128xf32>
    %143 = tpu.matmul %142, %140, %cst_103 {dimension_numbers = #tpu.dot_dimension_numbers<[1], [0], [0], [1], [0, 0, 1, 1], [], []>} : vector<16x16xf32>, vector<16x128xf32>, vector<16x128xf32> -> vector<16x128xf32>
    %c2_104 = arith.constant 2 : index
    %c0_105 = arith.constant 0 : index
    %c0_106 = arith.constant 0 : index
    %144 = vector.load %arg11[%c2_104, %c0_105, %c0_106] : memref<3x16x16xf32, #tpu.memory_space<vmem>>, vector<1x16x16xf32>
    %145 = vector.shape_cast %144 : vector<1x16x16xf32> to vector<16x16xf32>
    %cst_107 = arith.constant dense<0.000000e+00> : vector<16x128xf32>
    %146 = tpu.matmul %145, %140, %cst_107 {dimension_numbers = #tpu.dot_dimension_numbers<[1], [0], [0], [1], [0, 0, 1, 1], [], []>} : vector<16x16xf32>, vector<16x128xf32>, vector<16x128xf32> -> vector<16x128xf32>
    %147 = tpu.concatenate %143, %140, %146 in 1 : vector<16x128xf32>, vector<16x128xf32>, vector<16x128xf32> -> vector<16x384xf32>
    %148 = arith.truncf %147 : vector<16x384xf32> to vector<16x384xbf16>
    %c0_108 = arith.constant 0 : index
    %c0_109 = arith.constant 0 : index
    %149 = vector.load %arg4[%c0_108, %c0_109] : memref<384x128xbf16, #tpu.memory_space<vmem>>, vector<384x128xbf16>
    %cst_110 = arith.constant dense<0.000000e+00> : vector<16x128xf32>
    %150 = tpu.matmul %148, %149, %cst_110 {dimension_numbers = #tpu.dot_dimension_numbers<[1], [0], [0], [1], [0, 0, 1, 1], [], []>} : vector<16x384xbf16>, vector<384x128xbf16>, vector<16x128xf32> -> vector<16x128xf32>
    %c0_111 = arith.constant 0 : index
    %c0_112 = arith.constant 0 : index
    %151 = vector.load %arg5[%c0_111, %c0_112] : memref<1x128xf32, #tpu.memory_space<vmem>>, vector<1x128xf32>
    %152 = vector.broadcast %151 : vector<1x128xf32> to vector<16x128xf32>
    %153 = arith.addf %150, %152 : vector<16x128xf32>
    %cst_113 = arith.constant 0.000000e+00 : f32
    %154 = vector.broadcast %cst_113 : f32 to vector<16x128xf32>
    %155 = arith.cmpf oge, %153, %154 : vector<16x128xf32>
    %cst_114 = arith.constant 0.00999999977 : f32
    %156 = vector.broadcast %cst_114 : f32 to vector<16x128xf32>
    %157 = arith.mulf %156, %153 : vector<16x128xf32>
    %158 = arith.select %155, %153, %157 : vector<16x128xi1>, vector<16x128xf32>
    %159 = arith.truncf %158 : vector<16x128xf32> to vector<16x128xbf16>
    %c0_115 = arith.constant 0 : index
    %c0_116 = arith.constant 0 : index
    %160 = vector.load %arg6[%c0_115, %c0_116] : memref<128x128xbf16, #tpu.memory_space<vmem>>, vector<128x128xbf16>
    %cst_117 = arith.constant dense<0.000000e+00> : vector<16x128xf32>
    %161 = tpu.matmul %159, %160, %cst_117 {dimension_numbers = #tpu.dot_dimension_numbers<[1], [0], [0], [1], [0, 0, 1, 1], [], []>} : vector<16x128xbf16>, vector<128x128xbf16>, vector<16x128xf32> -> vector<16x128xf32>
    %c0_118 = arith.constant 0 : index
    %c0_119 = arith.constant 0 : index
    %162 = vector.load %arg7[%c0_118, %c0_119] : memref<1x128xf32, #tpu.memory_space<vmem>>, vector<1x128xf32>
    %163 = vector.broadcast %162 : vector<1x128xf32> to vector<16x128xf32>
    %164 = arith.addf %161, %163 : vector<16x128xf32>
    %c1_120 = arith.constant 1 : index
    %c0_121 = arith.constant 0 : index
    %c0_122 = arith.constant 0 : index
    %165 = vector.load %arg1[%c1_120, %c0_121, %c0_122] : memref<3x16x128xf32, #tpu.memory_space<vmem>>, vector<1x16x128xf32>
    %166 = vector.shape_cast %165 : vector<1x16x128xf32> to vector<16x128xf32>
    %167 = arith.addf %164, %166 : vector<16x128xf32>
    %cst_123 = arith.constant 0.000000e+00 : f32
    %168 = vector.broadcast %cst_123 : f32 to vector<16x128xf32>
    %169 = arith.cmpf oge, %167, %168 : vector<16x128xf32>
    %cst_124 = arith.constant 0.00999999977 : f32
    %170 = vector.broadcast %cst_124 : f32 to vector<16x128xf32>
    %171 = arith.mulf %170, %167 : vector<16x128xf32>
    %172 = arith.select %169, %167, %171 : vector<16x128xi1>, vector<16x128xf32>
    %c1_125 = arith.constant 1 : index
    %c0_126 = arith.constant 0 : index
    %c0_127 = arith.constant 0 : index
    %173 = vector.load %arg19[%c1_125, %c0_126, %c0_127] : memref<3x16x128xf32, #tpu.memory_space<vmem>>, vector<1x16x128xf32>
    %174 = vector.shape_cast %173 : vector<1x16x128xf32> to vector<16x128xf32>
    %175 = vector.shape_cast %172 : vector<16x128xf32> to vector<1x16x128xf32>
    tpu.vector_store %arg19[%c1_125, %c0_126, %c0_127], %175 {strides = array<i32>} : memref<3x16x128xf32, #tpu.memory_space<vmem>>, vector<1x16x128xf32>,
    %176 = vector.extract_strided_slice %70 {offsets = [0, 0], sizes = [1, 128], strides = [1, 1]} : vector<3x128xf32> to vector<1x128xf32>
    %177 = vector.extract_strided_slice %72 {offsets = [1, 0], sizes = [1, 128], strides = [1, 1]} : vector<3x128xf32> to vector<1x128xf32>
    %178 = arith.mulf %176, %177 : vector<1x128xf32>
    %c16_128 = arith.constant 16 : index
    %c0_129 = arith.constant 0 : index
    %179 = vector.load %arg20[%c16_128, %c0_129] : memref<48x128xf32, #tpu.memory_space<vmem>>, vector<16x128xf32>
    %180 = vector.broadcast %178 : vector<1x128xf32> to vector<16x128xf32>
    %181 = arith.mulf %180, %179 : vector<16x128xf32>
    %182 = vector.extract_strided_slice %70 {offsets = [1, 0], sizes = [1, 128], strides = [1, 1]} : vector<3x128xf32> to vector<1x128xf32>
    %183 = vector.extract_strided_slice %72 {offsets = [2, 0], sizes = [1, 128], strides = [1, 1]} : vector<3x128xf32> to vector<1x128xf32>
    %184 = arith.mulf %182, %183 : vector<1x128xf32>
    %c32_130 = arith.constant 32 : index
    %c0_131 = arith.constant 0 : index
    %185 = vector.load %arg20[%c32_130, %c0_131] : memref<48x128xf32, #tpu.memory_space<vmem>>, vector<16x128xf32>
    %186 = vector.broadcast %184 : vector<1x128xf32> to vector<16x128xf32>
    %187 = arith.mulf %186, %185 : vector<16x128xf32>
    %188 = arith.addf %181, %187 : vector<16x128xf32>
    %c0_132 = arith.constant 0 : index
    %c0_133 = arith.constant 0 : index
    %c0_134 = arith.constant 0 : index
    %189 = vector.load %arg11[%c0_132, %c0_133, %c0_134] : memref<3x16x16xf32, #tpu.memory_space<vmem>>, vector<1x16x16xf32>
    %190 = vector.shape_cast %189 : vector<1x16x16xf32> to vector<16x16xf32>
    %cst_135 = arith.constant dense<0.000000e+00> : vector<16x128xf32>
    %191 = tpu.matmul %190, %188, %cst_135 {dimension_numbers = #tpu.dot_dimension_numbers<[1], [0], [0], [1], [0, 0, 1, 1], [], []>} : vector<16x16xf32>, vector<16x128xf32>, vector<16x128xf32> -> vector<16x128xf32>
    %c2_136 = arith.constant 2 : index
    %c0_137 = arith.constant 0 : index
    %c0_138 = arith.constant 0 : index
    %192 = vector.load %arg11[%c2_136, %c0_137, %c0_138] : memref<3x16x16xf32, #tpu.memory_space<vmem>>, vector<1x16x16xf32>
    %193 = vector.shape_cast %192 : vector<1x16x16xf32> to vector<16x16xf32>
    %cst_139 = arith.constant dense<0.000000e+00> : vector<16x128xf32>
    %194 = tpu.matmul %193, %188, %cst_139 {dimension_numbers = #tpu.dot_dimension_numbers<[1], [0], [0], [1], [0, 0, 1, 1], [], []>} : vector<16x16xf32>, vector<16x128xf32>, vector<16x128xf32> -> vector<16x128xf32>
    %195 = tpu.concatenate %191, %188, %194 in 1 : vector<16x128xf32>, vector<16x128xf32>, vector<16x128xf32> -> vector<16x384xf32>
    %196 = arith.truncf %195 : vector<16x384xf32> to vector<16x384xbf16>
    %c0_140 = arith.constant 0 : index
    %c0_141 = arith.constant 0 : index
    %197 = vector.load %arg4[%c0_140, %c0_141] : memref<384x128xbf16, #tpu.memory_space<vmem>>, vector<384x128xbf16>
    %cst_142 = arith.constant dense<0.000000e+00> : vector<16x128xf32>
    %198 = tpu.matmul %196, %197, %cst_142 {dimension_numbers = #tpu.dot_dimension_numbers<[1], [0], [0], [1], [0, 0, 1, 1], [], []>} : vector<16x384xbf16>, vector<384x128xbf16>, vector<16x128xf32> -> vector<16x128xf32>
    %c0_143 = arith.constant 0 : index
    %c0_144 = arith.constant 0 : index
    %199 = vector.load %arg5[%c0_143, %c0_144] : memref<1x128xf32, #tpu.memory_space<vmem>>, vector<1x128xf32>
    %200 = vector.broadcast %199 : vector<1x128xf32> to vector<16x128xf32>
    %201 = arith.addf %198, %200 : vector<16x128xf32>
    %cst_145 = arith.constant 0.000000e+00 : f32
    %202 = vector.broadcast %cst_145 : f32 to vector<16x128xf32>
    %203 = arith.cmpf oge, %201, %202 : vector<16x128xf32>
    %cst_146 = arith.constant 0.00999999977 : f32
    %204 = vector.broadcast %cst_146 : f32 to vector<16x128xf32>
    %205 = arith.mulf %204, %201 : vector<16x128xf32>
    %206 = arith.select %203, %201, %205 : vector<16x128xi1>, vector<16x128xf32>
    %207 = arith.truncf %206 : vector<16x128xf32> to vector<16x128xbf16>
    %c0_147 = arith.constant 0 : index
    %c0_148 = arith.constant 0 : index
    %208 = vector.load %arg6[%c0_147, %c0_148] : memref<128x128xbf16, #tpu.memory_space<vmem>>, vector<128x128xbf16>
    %cst_149 = arith.constant dense<0.000000e+00> : vector<16x128xf32>
    %209 = tpu.matmul %207, %208, %cst_149 {dimension_numbers = #tpu.dot_dimension_numbers<[1], [0], [0], [1], [0, 0, 1, 1], [], []>} : vector<16x128xbf16>, vector<128x128xbf16>, vector<16x128xf32> -> vector<16x128xf32>
    %c0_150 = arith.constant 0 : index
    %c0_151 = arith.constant 0 : index
    %210 = vector.load %arg7[%c0_150, %c0_151] : memref<1x128xf32, #tpu.memory_space<vmem>>, vector<1x128xf32>
    %211 = vector.broadcast %210 : vector<1x128xf32> to vector<16x128xf32>
    %212 = arith.addf %209, %211 : vector<16x128xf32>
    %c2_152 = arith.constant 2 : index
    %c0_153 = arith.constant 0 : index
    %c0_154 = arith.constant 0 : index
    %213 = vector.load %arg1[%c2_152, %c0_153, %c0_154] : memref<3x16x128xf32, #tpu.memory_space<vmem>>, vector<1x16x128xf32>
    %214 = vector.shape_cast %213 : vector<1x16x128xf32> to vector<16x128xf32>
    %215 = arith.addf %212, %214 : vector<16x128xf32>
    %cst_155 = arith.constant 0.000000e+00 : f32
    %216 = vector.broadcast %cst_155 : f32 to vector<16x128xf32>
    %217 = arith.cmpf oge, %215, %216 : vector<16x128xf32>
    %cst_156 = arith.constant 0.00999999977 : f32
    %218 = vector.broadcast %cst_156 : f32 to vector<16x128xf32>
    %219 = arith.mulf %218, %215 : vector<16x128xf32>
    %220 = arith.select %217, %215, %219 : vector<16x128xi1>, vector<16x128xf32>
    %c2_157 = arith.constant 2 : index
    %c0_158 = arith.constant 0 : index
    %c0_159 = arith.constant 0 : index
    %221 = vector.load %arg19[%c2_157, %c0_158, %c0_159] : memref<3x16x128xf32, #tpu.memory_space<vmem>>, vector<1x16x128xf32>
    %222 = vector.shape_cast %221 : vector<1x16x128xf32> to vector<16x128xf32>
    %223 = vector.shape_cast %220 : vector<16x128xf32> to vector<1x16x128xf32>
    tpu.vector_store %arg19[%c2_157, %c0_158, %c0_159], %223 {strides = array<i32>} : memref<3x16x128xf32, #tpu.memory_space<vmem>>, vector<1x16x128xf32>,
    return
  }
  func.func @transform_0(%arg0: i32) -> (i32, i32, i32) {
    %c0_i32 = arith.constant 0 : i32
    %c0_i32_0 = arith.constant 0 : i32
    %c0_i32_1 = arith.constant 0 : i32
    return %arg0, %c0_i32, %c0_i32_0 : i32, i32, i32
  }
  func.func @transform_1(%arg0: i32) -> (i32, i32) {
    %c0_i32 = arith.constant 0 : i32
    %c0_i32_0 = arith.constant 0 : i32
    %c0_i32_1 = arith.constant 0 : i32
    return %c0_i32, %c0_i32_0 : i32, i32
  }
  func.func @transform_2(%arg0: i32) -> (i32, i32) {
    %c0_i32 = arith.constant 0 : i32
    %c0_i32_0 = arith.constant 0 : i32
    %c0_i32_1 = arith.constant 0 : i32
    return %c0_i32, %c0_i32_0 : i32, i32
  }
  func.func @transform_3(%arg0: i32) -> (i32, i32) {
    %c0_i32 = arith.constant 0 : i32
    %c0_i32_0 = arith.constant 0 : i32
    %c0_i32_1 = arith.constant 0 : i32
    return %c0_i32, %c0_i32_0 : i32, i32
  }
  func.func @transform_4(%arg0: i32) -> (i32, i32) {
    %c0_i32 = arith.constant 0 : i32
    %c0_i32_0 = arith.constant 0 : i32
    %c0_i32_1 = arith.constant 0 : i32
    return %c0_i32, %c0_i32_0 : i32, i32
  }
  func.func @transform_5(%arg0: i32) -> (i32, i32) {
    %c0_i32 = arith.constant 0 : i32
    %c0_i32_0 = arith.constant 0 : i32
    %c0_i32_1 = arith.constant 0 : i32
    return %c0_i32, %c0_i32_0 : i32, i32
  }
  func.func @transform_6(%arg0: i32) -> (i32, i32) {
    %c0_i32 = arith.constant 0 : i32
    %c0_i32_0 = arith.constant 0 : i32
    %c0_i32_1 = arith.constant 0 : i32
    return %c0_i32, %c0_i32_0 : i32, i32
  }
  func.func @transform_7(%arg0: i32) -> (i32, i32) {
    %c0_i32 = arith.constant 0 : i32
    %c0_i32_0 = arith.constant 0 : i32
    %c0_i32_1 = arith.constant 0 : i32
    return %c0_i32, %c0_i32_0 : i32, i32
  }
  func.func @transform_8(%arg0: i32) -> (i32, i32) {
    %c0_i32 = arith.constant 0 : i32
    %c0_i32_0 = arith.constant 0 : i32
    %c0_i32_1 = arith.constant 0 : i32
    return %c0_i32, %c0_i32_0 : i32, i32
  }
  func.func @transform_9(%arg0: i32) -> (i32, i32) {
    %c0_i32 = arith.constant 0 : i32
    %c0_i32_0 = arith.constant 0 : i32
    %c0_i32_1 = arith.constant 0 : i32
    return %c0_i32, %c0_i32_0 : i32, i32
  }
  func.func @transform_10(%arg0: i32) -> (i32, i32, i32) {
    %c0_i32 = arith.constant 0 : i32
    %c0_i32_0 = arith.constant 0 : i32
    %c0_i32_1 = arith.constant 0 : i32
    %c0_i32_2 = arith.constant 0 : i32
    return %c0_i32, %c0_i32_0, %c0_i32_1 : i32, i32, i32
  }
  func.func @transform_11(%arg0: i32) -> (i32, i32) {
    %c0_i32 = arith.constant 0 : i32
    %c0_i32_0 = arith.constant 0 : i32
    %c0_i32_1 = arith.constant 0 : i32
    return %c0_i32, %c0_i32_0 : i32, i32
  }
  func.func @transform_12(%arg0: i32) -> (i32, i32) {
    %c0_i32 = arith.constant 0 : i32
    %c0_i32_0 = arith.constant 0 : i32
    %c0_i32_1 = arith.constant 0 : i32
    return %c0_i32, %c0_i32_0 : i32, i32
  }
  func.func @transform_13(%arg0: i32) -> (i32, i32) {
    %c0_i32 = arith.constant 0 : i32
    %c0_i32_0 = arith.constant 0 : i32
    %c0_i32_1 = arith.constant 0 : i32
    return %c0_i32, %c0_i32_0 : i32, i32
  }
  func.func @transform_14(%arg0: i32) -> (i32, i32, i32) {
    %c0_i32 = arith.constant 0 : i32
    %c0_i32_0 = arith.constant 0 : i32
    %c0_i32_1 = arith.constant 0 : i32
    %c0_i32_2 = arith.constant 0 : i32
    return %c0_i32, %c0_i32_0, %c0_i32_1 : i32, i32, i32
  }
  func.func @transform_15(%arg0: i32) -> (i32, i32) {
    %c0_i32 = arith.constant 0 : i32
    %c0_i32_0 = arith.constant 0 : i32
    %c0_i32_1 = arith.constant 0 : i32
    return %c0_i32, %c0_i32_0 : i32, i32
  }
  func.func @transform_16(%arg0: i32) -> (i32, i32) {
    %c0_i32 = arith.constant 0 : i32
    %c0_i32_0 = arith.constant 0 : i32
    %c0_i32_1 = arith.constant 0 : i32
    return %c0_i32, %c0_i32_0 : i32, i32
  }
  func.func @transform_17(%arg0: i32) -> (i32, i32, i32) {
    %c0_i32 = arith.constant 0 : i32
    %c0_i32_0 = arith.constant 0 : i32
    %c0_i32_1 = arith.constant 0 : i32
    %c0_i32_2 = arith.constant 0 : i32
    return %c0_i32, %c0_i32_0, %c0_i32_1 : i32, i32, i32
  }
  func.func @transform_18(%arg0: i32) -> (i32, i32, i32) {
    %c0_i32 = arith.constant 0 : i32
    %c0_i32_0 = arith.constant 0 : i32
    %c0_i32_1 = arith.constant 0 : i32
    return %arg0, %c0_i32, %c0_i32_0 : i32, i32, i32
  }
}

</mosaic_0001>

<bundles_post_ra>
// kernel: tpu_custom_call.1
= control target key start
LH: loop header
LB: loop body
LE: loop exit
PB: predicated region body
PF: predicated region fallthrough
CT: control target
= control target key end

     0   :  { %s5793_s0 = inlined_call_operand.vmem [shape: f32[6,16,128], index: 0, kind: input, shape index: {}]   ;;  %s5794_s1 = inlined_call_operand.vmem [shape: bf16[128,128], index: 1, kind: input, shape index: {}]   ;;  %s5795_s2 = inlined_call_operand.hbm [shape: f32[1,128], index: 2, kind: input, shape index: {}]   ;;  %s5796_s3 = inlined_call_operand.hbm [shape: bf16[384,128], index: 3, kind: input, shape index: {}]   ;;  %s5797_s4 = inlined_call_operand.hbm [shape: f32[1,128], index: 4, kind: input, shape index: {}]   ;;  %s5798_s5 = inlined_call_operand.hbm [shape: bf16[128,128], index: 5, kind: input, shape index: {}]   ;;  %s5799_s6 = inlined_call_operand.hbm [shape: f32[1,128], index: 6, kind: input, shape index: {}]   ;;  %s5800_s7 = inlined_call_operand.vmem [shape: f32[128,8], index: 7, kind: input, shape index: {}]   ;;  %s5801_s8 = inlined_call_operand.hbm [shape: f32[3,48], index: 8, kind: input, shape index: {}]   ;;  %s5802_s9 = inlined_call_operand.vmem [shape: f32[8,128], index: 9, kind: input, shape index: {}]   ;;  %s5803_s10 = inlined_call_operand.hbm [shape: f32[3,16,16], index: 10, kind: input, shape index: {}]   ;;  %s5804_s11 = inlined_call_operand.vmem [shape: f32[6,3], index: 11, kind: input, shape index: {}]   ;;  %s5805_s12 = inlined_call_operand.vmem [shape: f32[6,8], index: 12, kind: input, shape index: {}]   ;;  %s5806_s13 = inlined_call_operand.hbm [shape: f32[3,6], index: 13, kind: input, shape index: {}]   ;;  %s5807_s14 = inlined_call_operand.vmem [shape: f32[3,8,2], index: 14, kind: input, shape index: {}]   ;;  %s5808_s15 = inlined_call_operand.vmem [shape: f32[1,2], index: 15, kind: input, shape index: {}]   ;;  %s5809_s16 = inlined_call_operand.vmem [shape: f32[2,8], index: 16, kind: input, shape index: {}]   ;;  %s5810_s17 = inlined_call_operand.vmem [shape: f32[3,3,3], index: 17, kind: input, shape index: {}]   ;;  %s5811_s18 = inlined_call_operand.hbm [shape: f32[6,16,128], index: 18, kind: output, shape index: {}]  }
   0x1   :  { %5823 = sst [smem:[#allocation30_spill]] %s5793_s0 }
   0x2   :  { %5824 = sst [smem:[#allocation31_spill]] %s5794_s1 }
   0x3   :  { %5825 = sst [smem:[#allocation32_spill]] %s5795_s2 }
   0x4   :  { %5826 = sst [smem:[#allocation33_spill]] %s5796_s3 }
   0x5   :  { %5827 = sst [smem:[#allocation34_spill]] %s5811_s18 }
   0x6   :  { %23 = vsyncpa [#allocation4], 0 }
   0x7   :  { %24 = vsyncpa [#allocation7], 0 }
   0x8   :  { %25 = vsyncpa [#allocation10], 0 }
   0x9   :  { %26 = vsyncpa [#allocation13], 0 }
   0xa   :  { %27 = vsyncpa [#allocation16], 0 }
   0xb   :  { %28 = vsyncpa [#allocation5], 0 }
   0xc   :  { %30 = vsyncpa [#allocation5 + $0x1], 0  ;;  %s5219_s27 = smov 0   ;;  %s5221_s28 = smov 0  }
   0xd   :  { %s5223_s29 = smov 0   ;;  %s5225_s30 = smov 0  }
   0xe LB: > { %5828 = sst [smem:[#allocation24_spill]] %s5093_s27  ;;  %s5240_s0 = sadd.s32 4294967295, %s5105_s30   ;;  %s5105_s30 = sphi %s5225_s30, %s5860_s30   ;;  %s5101_s29 = sphi %s5223_s29, %s5862_s29   ;;  %s5097_s28 = sphi %s5221_s28, %s5864_s28   ;;  %s5093_s27 = sphi %s5219_s27, %s5863_s27  }
   0xf   : > { %5829 = sst [smem:[#allocation25_spill]] %s5101_s29  ;;  %s3885_s19 = sadd.s32 4294967294, %s5105_s30  }
  0x10   : > { %5830 = sst [smem:[#allocation26_spill]] %s5105_s30  ;;  %s5244_s1 = sadd.s32 1, %s5105_s30  }
  0x11   : > { %5831 = sst [smem:[#allocation27_spill]] %s5244_s1  ;;  %s426_s20 = sadd.s32 1, %s5101_s29 }
  0x12   : > { %s423_s21 = ssub.s32 %s5105_s30, %s5244_s1  ;;  %p436_p0 = scmp.ne.s32.totalorder %s5101_s29, %s5097_s28 }
  0x13   : > { %p424_p1 = scmp.eq.s32.totalorder %s423_s21, 0  ;;  %p437_p2 = scmp.eq.s32.totalorder %s5240_s0, 1 }
  0x14   : > { %p442_p3 = scmp.ne.s32.totalorder %s5097_s28, %s5093_s27  ;;  %p443_p4 = scmp.eq.s32.totalorder %s3885_s19, 1 }
  0x15   : > { %s5255_s22 = scalar_select %p424_p1, %s5101_s29, %s426_s20  }
  0x16   : > { %p5257_p5 = por %p437_p2, %p436_p0  ;;  %p5261_p6 = por %p443_p4, %p442_p3 }
  0x17   : > { %5832 = sst [smem:[#allocation28_spill]] %s5255_s22  ;;  %p3886_p7 = scmp.ge.s32.totalorder %s5105_s30, 1 }
  0x18   : > { %s5833_s2 = scalar_select %p5257_p5, 1, 0 }
  0x19   : > { %s5834_s23 = scalar_select %p5261_p6, 1, 0 }
  0x1a   : > { %p450_p8 = scmp.lt.s32.totalorder %s5105_s30, 3  ;;  %p5819_p9 = scmp.eq.s32.totalorder %s5240_s0, 0 }
  0x1b   : > { %5835 = sst [smem:[#allocation29_spill]] %s5834_s23  ;;  %s5107_s25 = smov [#allocation6]  }
  0x1c   : > { %p5268_p10 = pnand %p3886_p7, %p450_p8  ;;  %s476_s26 = sshll.u32 %s5107_s25, 4  ;;  %s477_s26 = int_to_ptr.vmem [resolvable:$true] %s476_s26 }
  0x1d   : > { %s5108_s20 = smov [#allocation9]   ;;  %s5109_s22 = smov [#allocation12]  }
  0x1e   : > { %s5836_s24 = scalar_select %p5268_p10, 1, 0 }
  0x1f   : > { %p4611_p11 = pneg %p5268_p10  ;;  %s500_s21 = sshll.u32 %s5108_s20, 4  ;;  %s501_s21 = int_to_ptr.vmem [resolvable:$true] %s500_s21 }
  0x20   : > { %s528_s29 = sshll.u32 %s5109_s22, 4  ;;  %s4828_s25 = scalar_lea.vmem %s477_s26, 3072  ;;  %s529_s29 = int_to_ptr.vmem [resolvable:$true] %s528_s29 }
  0x21   : > { %p5276_p12 = pnand %p5819_p9, %p4611_p11  ;;  %p4829_p0 = scmp.ne.s32.totalorder %s477_s26, %s4828_s25 }
  0x22   : > { %p4836_p3 = scmp.lt.s32.totalorder %s477_s26, %s477_s26  ;;  %p4837_p4 = scmp.lt.s32.totalorder %s4828_s25, %s4828_s25 }
  0x23   : > { %p5282_p13 = pneg %p5276_p12 }
  0x24   : > { %p4838_p7 = por %p4837_p4, %p4836_p3 }
  0x25   : > { %p4831_p1 = pnand %p4829_p0, %p5282_p13 }
  0x27   : > { %p4832_p2 = pneg %p4831_p1 }
  0x29   : > { %p4839_p8 = pnand %p4838_p7, %p4832_p2 }
  0x2b   : > { %4842 = shalt.err (!%p4839_p8)
}
  0x2c   : > { %s5110_s20 = smov 64   ;;  %s5111_s22 = smov 4  }
  0x2d   : > { %s5839_s3 = sld [smem:[#allocation33_spill]]  ;;  %s4854_s30 = scalar_lea.vmem %s501_s21, 1024 }
  0x2e   : > { %p4855_p11 = scmp.ne.s32.totalorder %s501_s21, %s4854_s30  ;;  %p4862_p1 = scmp.lt.s32.totalorder %s501_s21, %s501_s21 }
  0x2f   : > { %p4863_p6 = scmp.lt.s32.totalorder %s4854_s30, %s4854_s30 }
  0x30   : > { %p4857_p9 = pnand %p4855_p11, %p5282_p13 }
  0x31   : > { %p4864_p5 = por %p4863_p6, %p4862_p1 }
  0x32   : > { %p4858_p0 = pneg %p4857_p9 }
  0x33   : > { %4617 = dma.hbm_to_vmem [thread:$0]  (!%p5276_p12), %s5839_s3, 3072, %s477_s26, [#allocation7], %s5110_s20, %s5110_s20, %s5111_s22  }
  0x34   : > { %p4865_p3 = pnand %p4864_p5, %p4858_p0 }
  0x36   : > { %4868 = shalt.err (!%p4865_p3)
}
  0x37   : > { %4623 = dma.hbm_to_vmem [thread:$0]  (!%p5276_p12), %s5798_s5, 1024, %s501_s21, [#allocation10], %s5110_s20, %s5110_s20, %s5111_s22  }
  0x38   : > { %s4880_s27 = scalar_lea.vmem %s529_s29, 64  ;;  %p4888_p8 = scmp.lt.s32.totalorder %s529_s29, %s529_s29 }
  0x39   : > { %p4881_p2 = scmp.ne.s32.totalorder %s529_s29, %s4880_s27  ;;  %p4889_p9 = scmp.lt.s32.totalorder %s4880_s27, %s4880_s27 }
  0x3b   : > { %p4883_p4 = pnand %p4881_p2, %p5282_p13  ;;  %p4890_p11 = por %p4889_p9, %p4888_p8 }
  0x3d   : > { %p4884_p7 = pneg %p4883_p4 }
  0x3f   : > { %p4891_p10 = pnand %p4890_p11, %p4884_p7 }
  0x41   : > { %4894 = shalt.err (!%p4891_p10)
}
  0x42   : > { %4629 = dma.hbm_to_vmem [thread:$0]  (!%p5276_p12), %s5801_s8, 64, %s529_s29, [#allocation13]  }
  0x43   : > { %s5112_s18 = smov [#allocation3]   ;;  %s5113_s21 = smov [#allocation8]  }
  0x44   : > { %s466_s26 = sshll.u32 %s5112_s18, 4  ;;  %s490_s20 = sshll.u32 %s5113_s21, 4  ;;  %s467_s26 = int_to_ptr.vmem [resolvable:$true] %s466_s26  ;;  %s491_s20 = int_to_ptr.vmem [resolvable:$true] %s490_s20 }
  0x45   : > { %s4906_s22 = scalar_lea.vmem %s467_s26, 16  ;;  %s4913_s25 = scalar_lea.vmem %s467_s26, 32 }
  0x46   : > { %p4907_p5 = scmp.ne.s32.totalorder %s467_s26, %s4906_s22  ;;  %p4914_p1 = scmp.lt.s32.totalorder %s467_s26, %s467_s26 }
  0x47   : > { %p4915_p10 = scmp.lt.s32.totalorder %s4913_s25, %s4906_s22 }
  0x48   : > { %p4909_p6 = pnand %p4907_p5, %p5282_p13 }
  0x49   : > { %p4916_p3 = por %p4915_p10, %p4914_p1 }
  0x4a   : > { %p4910_p0 = pneg %p4909_p6 }
  0x4c   : > { %p4917_p2 = pnand %p4916_p3, %p4910_p0 }
  0x4e   : > { %4920 = shalt.err (!%p4917_p2)
}
  0x4f   : > { %s5840_s30 = sld [smem:[#allocation32_spill]]  ;;  %s4932_s23 = scalar_lea.vmem %s491_s20, 16 }
  0x50   : > { %p4933_p4 = scmp.ne.s32.totalorder %s491_s20, %s4932_s23  ;;  %s4939_s18 = scalar_lea.vmem %s491_s20, 32 }
  0x51   : > { %p4940_p9 = scmp.lt.s32.totalorder %s491_s20, %s491_s20  ;;  %p4941_p11 = scmp.lt.s32.totalorder %s4939_s18, %s4932_s23 }
  0x52   : > { %p4935_p7 = pnand %p4933_p4, %p5282_p13 }
  0x53   : > { %p4942_p5 = por %p4941_p11, %p4940_p9 }
  0x54   : > { %p4936_p8 = pneg %p4935_p7 }
  0x55   : > { %4614 = dma.hbm_to_vmem [thread:$0]  (!%p5276_p12), %s5840_s30, 16, %s467_s26, [#allocation4]  }
  0x56   : > { %p4943_p6 = pnand %p4942_p5, %p4936_p8 }
  0x58   : > { %4946 = shalt.err (!%p4943_p6)
}
  0x59   : > { %4620 = dma.hbm_to_vmem [thread:$0]  (!%p5276_p12), %s5797_s4, 16, %s491_s20, [#allocation7]  }
  0x5a   : > { %s5114_s26 = smov [#allocation11]   ;;  %s5115_s27 = smov [#allocation14]  }
  0x5b   : > { %s514_s25 = sshll.u32 %s5114_s26, 4  ;;  %s541_s29 = sshll.u32 %s5115_s27, 4  ;;  %s515_s25 = int_to_ptr.vmem [resolvable:$true] %s514_s25  ;;  %s542_s29 = int_to_ptr.vmem [resolvable:$true] %s541_s29 }
  0x5c   : > { %s4958_s30 = scalar_lea.vmem %s515_s25, 16  ;;  %s4965_s23 = scalar_lea.vmem %s515_s25, 32 }
  0x5d   : > { %p4959_p0 = scmp.ne.s32.totalorder %s515_s25, %s4958_s30  ;;  %p4966_p3 = scmp.lt.s32.totalorder %s515_s25, %s515_s25 }
  0x5e   : > { %p4967_p2 = scmp.lt.s32.totalorder %s4965_s23, %s4958_s30 }
  0x5f   : > { %p4961_p1 = pnand %p4959_p0, %p5282_p13 }
  0x60   : > { %p4968_p4 = por %p4967_p2, %p4966_p3 }
  0x61   : > { %p4962_p10 = pneg %p4961_p1 }
  0x63   : > { %p4969_p7 = pnand %p4968_p4, %p4962_p10 }
  0x65   : > { %4972 = shalt.err (!%p4969_p7)
}
  0x66   : > { %4626 = dma.hbm_to_vmem [thread:$0]  (!%p5276_p12), %s5799_s6, 16, %s515_s25, [#allocation10]  }
  0x67   : > { %s4984_s21 = scalar_lea.vmem %s542_s29, 768  ;;  %p4992_p5 = scmp.lt.s32.totalorder %s542_s29, %s542_s29 }
  0x68   : > { %p4985_p8 = scmp.ne.s32.totalorder %s542_s29, %s4984_s21  ;;  %p4993_p6 = scmp.lt.s32.totalorder %s4984_s21, %s4984_s21 }
  0x6a   : > { %p4987_p9 = pnand %p4985_p8, %p5282_p13  ;;  %p4994_p0 = por %p4993_p6, %p4992_p5 }
  0x6c   : > { %p4988_p11 = pneg %p4987_p9 }
  0x6e   : > { %p4995_p1 = pnand %p4994_p0, %p4988_p11 }
  0x70   : > { %4998 = shalt.err (!%p4995_p1)
}
  0x71   : > { %s5116_s22 = smov 128   ;;  %s5117_s26 = smov 8  }
  0x72   : > { %4632 = dma.hbm_to_vmem [thread:$0]  (!%p5276_p12), %s5803_s10, 768, %s542_s29, [#allocation13], %s5116_s22, %s5116_s22, %s5117_s26  }
  0x73   : > { %s5118_s25 = smov [#allocation15]  }
  0x74   : > { %s561_s23 = sshll.u32 %s5118_s25, 4  ;;  %s562_s23 = int_to_ptr.vmem [resolvable:$true] %s561_s23 }
  0x75   : > { %s5010_s18 = scalar_lea.vmem %s562_s23, 64  ;;  %p5018_p4 = scmp.lt.s32.totalorder %s562_s23, %s562_s23 }
  0x76   : > { %p5011_p10 = scmp.ne.s32.totalorder %s562_s23, %s5010_s18  ;;  %p5019_p7 = scmp.lt.s32.totalorder %s5010_s18, %s5010_s18 }
  0x78   : > { %p5013_p3 = pnand %p5011_p10, %p5282_p13  ;;  %p5020_p8 = por %p5019_p7, %p5018_p4 }
  0x7a   : > { %p5014_p2 = pneg %p5013_p3 }
  0x7c   : > { %p5021_p9 = pnand %p5020_p8, %p5014_p2 }
  0x7e   : > { %5024 = shalt.err (!%p5021_p9)
}
  0x7f   : > { %4635 = dma.hbm_to_vmem [thread:$0]  (!%p5276_p12), %s5806_s13, 64, %s562_s23, [#allocation16]  }
  0x80   : > { %p5841_p11 = scmp.ne.s32.totalorder %s5836_s24, 0 }
  0x81   : > { %p5842_p5 = scmp.eq.s32.totalorder (!%p5841_p11), %s5240_s0, 0 }
  0x82   : > { %596 = sbr.rel (%p5841_p11) target bundleno = 3135 (0xc3f), region = 92 }
  0x87   : > { %5068 = dma.done.wait (%p5842_p5), [#allocation4], 16   ;;  %p5843_p13 = pmov %p5842_p5 }
  0x88   : > { %p5844_p6 = pmov %p5842_p5 }
  0x89   : > { %5070 = vsyncadd (%p5843_p13), [#allocation4], 4294967280 }
  0x8a   : > { %5072 = dma.done.wait (%p5844_p6), [#allocation7], 3088   ;;  %p5845_p0 = pmov %p5842_p5 }
  0x8c   : > { %5074 = vsyncadd (%p5845_p0), [#allocation7], 4294964208  ;;  %p5846_p1 = pmov %p5845_p0 }
  0x8d   : > { %p5847_p12 = pmov %p5845_p0 }
  0x8e   : > { %5076 = dma.done.wait (%p5846_p1), [#allocation10], 1040  }
  0x8f   : > { %5078 = vsyncadd (%p5847_p12), [#allocation10], 4294966256  ;;  %p5848_p10 = pmov %p5845_p0 }
  0x90   : > { %p5849_p3 = pmov %p5845_p0 }
  0x91   : > { %5080 = dma.done.wait (%p5848_p10), [#allocation13], 832  }
  0x92   : > { %5082 = vsyncadd (%p5849_p3), [#allocation13], 4294966464  ;;  %p5850_p2 = pmov %p5845_p0 }
  0x93   : > { %p5851_p4 = pmov %p5845_p0 }
  0x94   : > { %5084 = dma.done.wait (%p5850_p2), [#allocation16], 64  }
  0x95   : > { %5086 = vsyncadd (%p5851_p4), [#allocation16], 4294967232  ;;  %v5119_v0 = vmov 0.0   ;;  %vm5120_vm0 = vmmov 0   ;;  %s5852_s19 = sld [smem:[#allocation31_spill]]  ;;  %s679_s29 = smul.u32 3, %s5240_s0 }
  0x96   : > { %4275 = vmatprep.subr.bf16.mxu0 %v5119_v0  ;;  %4291 = vmatprep.mubr.msk.bf16.mxu0 %vm5120_vm0, %v5119_v0  ;;  %s5853_s25 = sld [smem:[#allocation30_spill]]  ;;  %v864_v11 = vld [vmem:[%s5800_s7 + $0x78] sm:$0xff]  ;;  %v863_v13 = vld [vmem:[%s5800_s7 + $0x70] sm:$0xff]  ;;  %v862_v16 = vld [vmem:[%s5800_s7 + $0x68] sm:$0xff]  ;;  %vm961_vm7 = vcmask 392192   ;;  %vm1041_vm8 = vcmask 1042432  }
  0x97   : > { %4344 = vmatprep.subr.mxu1 %v5119_v0  ;;  %4356 = vmatprep.mubr.msk.f32.mxu1 %vm5120_vm0, %v5119_v0  ;;  %p680_p7 = scmp.lt.s32.totalorder %s679_s29, 5  ;;  %v861_v17 = vld [vmem:[%s5800_s7 + $0x60] sm:$0xff]  ;;  %v860_v18 = vld [vmem:[%s5800_s7 + $0x58] sm:$0xff]  ;;  %v859_v20 = vld [vmem:[%s5800_s7 + $0x50] sm:$0xff]  ;;  %vm1037_vm9 = vcmask 23552   ;;  %vm1121_vm10 = vcmask 1045504  }
  0x98   : > { %v858_v23 = vld [vmem:[%s5800_s7 + $0x48] sm:$0xff]  ;;  %v857_v24 = vld [vmem:[%s5800_s7 + $0x40] sm:$0xff]  ;;  %v856_v25 = vld [vmem:[%s5800_s7 + $0x38] sm:$0xff]  ;;  %vm1117_vm11 = vcmask 48128   ;;  %vm1216_vm12 = vcmask 64512   ;;  %vm1681_vm13 = vcmask 1041408  }
  0x99   : > { %s5866_s29 = smov (!%p680_p7, %s679_s29), 5  ;;  %v855_v27 = vld [vmem:[%s5800_s7 + $0x30] sm:$0xff]  ;;  %v854_v28 = vld [vmem:[%s5800_s7 + $0x28] sm:$0xff]  ;;  %v853_v29 = vld [vmem:[%s5800_s7 + $0x20] sm:$0xff]  ;;  %vm1195_vm14 = vcmask 59392   ;;  %vm1677_vm15 = vcmask 15360  }
  0x9a   : > { %s4065_s21 = sshll.u32 %s5866_s29, 4  ;;  %v852_v30 = vld [vmem:[%s5800_s7 + $0x18] sm:$0xff]  ;;  %v851_v31 = vld [vmem:[%s5800_s7 + $0x10] sm:$0xff]  ;;  %v850_v32 = vld [vmem:[%s5800_s7 + $0x8] sm:$0xff]  ;;  %s676_s18 = sand.u32 1, %s5097_s28  }
  0x9b   : > { %v4705_v1 = vld [vmem:[%s5852_s19 + $0x38] sm:$0xff]   ;;  %v4706_v2 = vld [vmem:[%s5852_s19 + $0x30] sm:$0xff]   ;;  %v4707_v3 = vld [vmem:[%s5852_s19 + $0x28] sm:$0xff]   ;;  %s4576_s20 = smul.u32 48, %s676_s18  ;;  %s5854_s26 = sld [smem:[#allocation34_spill]] }
  0x9c   : > { %4276 = vmatpush3.bf16.msra.mxu0 %v4705_v1  ;;  %v4708_v4 = vld [vmem:[%s5852_s19 + $0x20] sm:$0xff]   ;;  %v4709_v5 = vld [vmem:[%s5852_s19 + $0x18] sm:$0xff]   ;;  %v4710_v6 = vld [vmem:[%s5852_s19 + $0x10] sm:$0xff]   ;;  %s5400_s23 = scalar_lea.vmem %s5853_s25, %s4065_s21  ;;  %s4068_s24 = smul.u32 768, %s5240_s0 }
  0x9d   : > { %4277 = vmatprep.subr.bf16.mxu0 %v5119_v0  ;;  %v4711_v7 = vld [vmem:[%s5852_s19 + $0x8] sm:$0xff]   ;;  %v4712_v8 = vld [vmem:[%s5852_s19] sm:$0xff]   ;;  %v690_v14 = vld [vmem:[%s5400_s23 + $0x10] sm:$0xff]  ;;  %s5704_s1 = scalar_lea.vmem [#allocation17], %s4576_s20  ;;  %s5753_s30 = scalar_lea.sflag [#allocation5], %s676_s18 }
  0x9e   : > { %v688_v9 = vld [vmem:[%s5400_s23] sm:$0xff]  ;;  %v689_v10 = vld [vmem:[%s5400_s23 + $0x8] sm:$0xff]  ;;  %v691_v15 = vld [vmem:[%s5400_s23 + $0x18] sm:$0xff]  ;;  %s3744_s21 = sshll.u32 %s5704_s1, 4  ;;  %p5855_p9 = scmp.ne.s32.totalorder %s5833_s2, 0  ;;  %s5743_s21 = int_to_ptr.vmem [resolvable:$true] %s3744_s21 }
  0x9f   : > { %v694_v12 = vpack.c.bf16 %v689_v10, %v688_v9  ;;  %v695_v19 = vpack.c.bf16 %v691_v15, %v690_v14  ;;  %v692_v21 = vld [vmem:[%s5400_s23 + $0x20] sm:$0xff]  ;;  %v693_v22 = vld [vmem:[%s5400_s23 + $0x28] sm:$0xff]  ;;  %s5025_s0 = scalar_lea.vmem %s5743_s21, 768  ;;  %s5121_s25 = smov [#allocation17]  }
  0xa0   : > { %4278 = vmatpush3.bf16.msra.mxu0 %v4706_v2  ;;  %v696_v26 = vpack.c.bf16 %v693_v22, %v692_v21  ;;  %v849_v33 = vld [vmem:[%s5800_s7] sm:$0xff]  ;;  %p5026_p8 = scmp.ne.s32.totalorder %s5743_s21, %s5025_s0  ;;  %s5029_s29 = sshll.u32 %s5121_s25, 4  ;;  %s5030_s29 = int_to_ptr.vmem [resolvable:$false] %s5029_s29 }
  0xa1   : > { %4279 = vmatprep.subr.bf16.mxu0 %v5119_v0  ;;  %v3907_v34 = vld [vmem:[#allocation3] ss:$0 sm:$0xff]  ;;  %s5748_s27 = scalar_lea.hbm %s5854_s26, %s4068_s24  ;;  %s5031_s20 = scalar_lea.vmem %s5030_s29, 1536 }
  0xa2   : > { %v1035_v9 = vld [vmem:[%s5804_s11] sm:$0x3f]  ;;  %p5027_p11 = pnand %p5026_p8, %p5855_p9  ;;  %p5032_p13 = scmp.lt.s32.totalorder %s5743_s21, %s5030_s29 }
  0xa3   : > { %p5033_p6 = scmp.lt.s32.totalorder %s5031_s20, %s5025_s0 }
  0xa4   : > { %4280 = vmatpush3.bf16.msra.mxu0 %v4707_v3  ;;  %p5028_p5 = pneg %p5027_p11 }
  0xa5   : > { %4281 = vmatprep.subr.bf16.mxu0 %v5119_v0  ;;  %p5034_p0 = por %p5033_p6, %p5032_p13 }
  0xa7   : > { %p5035_p1 = pnand %p5034_p0, %p5028_p5 }
  0xa8   : > { %4282 = vmatpush3.bf16.msra.mxu0 %v4708_v4 }
  0xa9   : > { %4283 = vmatprep.subr.bf16.mxu0 %v5119_v0 }
  0xac   : > { %4284 = vmatpush3.bf16.msra.mxu0 %v4709_v5 }
  0xad   : > { %4285 = vmatprep.subr.bf16.mxu0 %v5119_v0 }
  0xb0   : > { %4286 = vmatpush3.bf16.msra.mxu0 %v4710_v6 }
  0xb1   : > { %4287 = vmatprep.subr.bf16.mxu0 %v5119_v0 }
  0xb4   : > { %4288 = vmatpush3.bf16.msra.mxu0 %v4711_v7 }
  0xb5   : > { %4289 = vmatprep.subr.bf16.mxu0 %v5119_v0 }
  0xb8   : > { %4290 = vmatpush3.bf16.msra.mxu0 %v4712_v8  ;;  %v960_v8 = vld [vmem:[#allocation12] sm:$0x7] }
  0xb9   : > { %4303 = vmatprep.subr.mxu0 %v864_v11 }
  0xbb   : > { %4292 = vmatmul.mubr.bf16.vlgmr.msra.gmra.mxu0 %v694_v12  ;;  %v1036_v12 = vld [vmem:[%s5805_s12] sm:$0x3f] }
  0xbc   : > { %4295 = vmatprep.mubr.msk.bf16.mxu0 %vm5120_vm0, %v5119_v0  ;;  %4304 = vmatpush3.msra.mxu0 %v864_v11 }
  0xbd   : > { %4305 = vmatprep.subr.mxu0 %v863_v13 }
  0xbe   : > { %4306 = vmatpush3.msra.mxu0 %v863_v13 }
  0xbf   : > { %4307 = vmatprep.subr.mxu0 %v862_v16 }
  0xc0   : > { %4308 = vmatpush3.msra.mxu0 %v862_v16 }
  0xc1   : > { %4309 = vmatprep.subr.mxu0 %v861_v17 }
  0xc2   : > { %4310 = vmatpush3.msra.mxu0 %v861_v17  ;;  %v1116_v17 = vld [vmem:[#allocation15] sm:$0x7] }
  0xc3   : > { %4296 = vmatmul.mubr.bf16.gmra.mxu0 %v695_v19  ;;  %4311 = vmatprep.subr.mxu0 %v860_v18  ;;  %v3922_v19 = vld [vmem:[%s5807_s14 + $0x8] sm:$0xff] }
  0xc4   : > { %4299 = vmatprep.mubr.msk.bf16.mxu0 %vm5120_vm0, %v5119_v0  ;;  %4312 = vmatpush3.msra.mxu0 %v860_v18  ;;  %v1215_v18 = vld [vmem:[%s5807_s14] sm:$0xff] }
  0xc5   : > { %4313 = vmatprep.subr.mxu0 %v859_v20 }
  0xc6   : > { %4314 = vmatpush3.msra.mxu0 %v859_v20 }
  0xc7   : > { %4315 = vmatprep.subr.mxu0 %v858_v23 }
  0xc8   : > { %4316 = vmatpush3.msra.mxu0 %v858_v23 }
  0xc9   : > { %4317 = vmatprep.subr.mxu0 %v857_v24 }
  0xca   : > { %4318 = vmatpush3.msra.mxu0 %v857_v24  ;;  %v3924_v24 = vld [vmem:[%s5810_s17 + $0x4] sm:$0x7] }
  0xcb   : > { %4300 = vmatmul.mubr.bf16.gmra.mxu0 %v696_v26  ;;  %4319 = vmatprep.subr.mxu0 %v856_v25 }
  0xcc   : > { %4320 = vmatpush3.msra.mxu0 %v856_v25 }
  0xcd   : > { %4321 = vmatprep.subr.mxu0 %v855_v27 }
  0xce   : > { %4322 = vmatpush3.msra.mxu0 %v855_v27  ;;  %v1289_v27 = vld [vmem:[%s5810_s17] sm:$0x7] }
  0xcf   : > { %4323 = vmatprep.subr.mxu0 %v854_v28 }
  0xd0   : > { %4324 = vmatpush3.msra.mxu0 %v854_v28  ;;  %v3929_v28 = vld [vmem:[%s5807_s14 + $0x10] sm:$0xff] }
  0xd1   : > { %4325 = vmatprep.subr.mxu0 %v853_v29 }
  0xd2   : > { %4326 = vmatpush3.msra.mxu0 %v853_v29  ;;  %v1676_v29 = vld [vmem:[%s5809_s16] sm:$0x3] }
  0xd3   : > { %4327 = vmatprep.subr.mxu0 %v852_v30 }
  0xd4   : > { %4328 = vmatpush3.msra.mxu0 %v852_v30 }
  0xd5   : > { %4329 = vmatprep.subr.mxu0 %v851_v31 }
  0xd6   : > { %4330 = vmatpush3.msra.mxu0 %v851_v31 }
  0xd7   : > { %4331 = vmatprep.subr.mxu0 %v850_v32 }
  0xd8   : > { %4332 = vmatpush3.msra.mxu0 %v850_v32 }
  0xd9   : > { %4333 = vmatprep.subr.mxu0 %v849_v33 }
  0xda   : > { %4334 = vmatpush3.msra.mxu0 %v849_v33 }
  0xdb   : > { %4399 = vmatprep.subr.mxu0 %v5119_v0 }
 0x17b   : > { %v802_v35 = vpop.f32.mrf.mxu0 }
 0x17c   : > { %v803_v36 = vadd.f32 %v3907_v34, %v802_v35 }
 0x17d   : > { %v4293_v37 = vpop.f32.mrf.mxu0 }
 0x17e   : > { %v831_v38 = vmul.f32 0.01, %v803_v36  ;;  %vm825_vm1 = vcmp.ge.f32.partialorder %v803_v36, 0.0 }
 0x17f   : > { %v805_v39 = vpop.f32.mrf.mxu0 }
 0x180   : > { %v806_v40 = vadd.f32 %v3907_v34, %v805_v39  ;;  %v5466_v41 = vsel %vm825_vm1, %v803_v36, %v831_v38  ;;  %vm1932_vm1 = vcmask 130048  }
 0x181   : > { %v4294_v42 = vpop.f32.mrf.mxu0  ;;  %4335 = vmatprep.mubr.f32.mxu0 %v5466_v41 }
 0x182   : > { %vm826_vm2 = vcmp.ge.f32.partialorder %v806_v40, 0.0  ;;  %v832_v43 = vmul.f32 0.01, %v806_v40 }
 0x183   : > { %v810_v44 = vpop.f32.mrf.mxu0 }
 0x184   : > { %v5469_v45 = vsel %vm826_vm2, %v806_v40, %v832_v43  ;;  %v811_v46 = vadd.f32 %v3907_v34, %v810_v44 }
 0x185   : > { %v4297_v47 = vpop.f32.mrf.mxu0  ;;  %4336 = vmatmul.mubr.f32.vlgmr.msra.gmra.mxu0 %v5469_v45 }
 0x186   : > { %vm827_vm3 = vcmp.ge.f32.partialorder %v811_v46, 0.0  ;;  %v833_v48 = vmul.f32 0.01, %v811_v46  ;;  %4400 = vmatpush3.msk.msra.mxu0 %vm1681_vm13, %v1676_v29 }
 0x187   : > { %v813_v49 = vpop.f32.mrf.mxu0  ;;  %4409 = vmatprep.subr.mxu0 %v5119_v0 }
 0x188   : > { %v814_v50 = vadd.f32 %v3907_v34, %v813_v49  ;;  %v5472_v51 = vsel %vm827_vm3, %v811_v46, %v833_v48 }
 0x189   : > { %v4298_v52 = vpop.f32.mrf.mxu0  ;;  %4338 = vmatprep.mubr.f32.mxu0 %v5472_v51 }
 0x18a   : > { %vm828_vm4 = vcmp.ge.f32.partialorder %v814_v50, 0.0  ;;  %v834_v53 = vmul.f32 0.01, %v814_v50 }
 0x18b   : > { %v818_v54 = vpop.f32.mrf.mxu0 }
 0x18c   : > { %v819_v55 = vadd.f32 %v3907_v34, %v818_v54  ;;  %v5475_v56 = vsel %vm828_vm4, %v814_v50, %v834_v53 }
 0x18d   : > { %v4301_v57 = vpop.f32.mrf.mxu0  ;;  %4339 = vmatmul.mubr.f32.gmra.mxu0 %v5475_v56 }
 0x18e   : > { %v835_v58 = vmul.f32 0.01, %v819_v55  ;;  %vm829_vm5 = vcmp.ge.f32.partialorder %v819_v55, 0.0 }
 0x18f   : > { %v821_v59 = vpop.f32.mrf.mxu0 }
 0x190   : > { %v822_v60 = vadd.f32 %v3907_v34, %v821_v59  ;;  %v5478_v61 = vsel %vm829_vm5, %v819_v55, %v835_v58  ;;  %v3931_v55 = vld [vmem:[%s5810_s17 + $0x8] sm:$0x7]  ;;  %v1761_v58 = vld [vmem:[%s5802_s9] sm:$0xff] }
 0x191   : > { %v4302_v62 = vpop.f32.mrf.mxu0  ;;  %4341 = vmatprep.mubr.f32.mxu0 %v5478_v61 }
 0x192   : > { %v836_v63 = vmul.f32 0.01, %v822_v60  ;;  %vm830_vm6 = vcmp.ge.f32.partialorder %v822_v60, 0.0 }
 0x194   : > { %v5481_v1 = vsel %vm830_vm6, %v822_v60, %v836_v63 }
 0x195   : > { %4342 = vmatmul.mubr.f32.gmra.mxu0 %v5481_v1 }
 0x196   : > { %4401 = vmatprep.mubr.msk.f32.mxu0 %vm5120_vm0, %v5119_v0 }
 0x245   : > { %v4337_v2 = vpop.f32.mrf.mxu0 }
 0x247   : > { %v931_v3 = vpop.f32.mrf.mxu0 }
 0x24d   : > { %v4340_v4 = vpop.f32.mrf.mxu0 }
 0x24f   : > { %v941_v5 = vpop.f32.mrf.mxu0 }
 0x255   : > { %v4343_v6 = vpop.f32.mrf.mxu0 }
 0x256   : > { %4345 = vmatpush3.msra.mxu1 %v4343_v6 }
 0x257   : > { %v951_v7 = vpop.f32.mrf.mxu0  ;;  %4346 = vmatprep.subr.mxu1 %v5119_v0 }
 0x258   : > { %4347 = vmatpush3.msra.mxu1 %v951_v7 }
 0x259   : > { %4348 = vmatprep.subr.mxu1 %v5119_v0 }
 0x25a   : > { %4349 = vmatpush3.msra.mxu1 %v4340_v4 }
 0x25b   : > { %4350 = vmatprep.subr.mxu1 %v5119_v0 }
 0x25c   : > { %4351 = vmatpush3.msra.mxu1 %v941_v5 }
 0x25d   : > { %4352 = vmatprep.subr.mxu1 %v5119_v0 }
 0x25e   : > { %4353 = vmatpush3.msra.mxu1 %v4337_v2  ;;  %v3934_v2 = vld [vmem:[%s5808_s15] ss:$0 sm:$0xff] }
 0x25f   : > { %4354 = vmatprep.subr.mxu1 %v5119_v0 }
 0x260   : > { %4355 = vmatpush3.msra.mxu1 %v931_v3 }
 0x261   : > { %4357 = vmatmul.mubr.msk.f32.vlgmr.msra.gmra.mxu1 %vm961_vm7, %v960_v8  ;;  %4359 = vmatprep.subr.mxu1 %v5119_v0 }
 0x262   : > { %4361 = vmatprep.mubr.msk.f32.mxu1 %vm5120_vm0, %v5119_v0 }
 0x321   : > { %v1031_v10 = vpop.f32.mrf.mxu1 }
 0x322   : > { %4360 = vmatpush3.msk.msra.mxu1 %vm1041_vm8, %v1031_v10 }
 0x323   : > { %v4358_v11 = vpop.f32.mrf.mxu1  ;;  %4362 = vmatmul.mubr.msk.f32.vlgmr.msra.gmra.mxu1 %vm1037_vm9, %v1035_v9  ;;  %4364 = vmatprep.subr.mxu1 %v5119_v0 }
 0x324   : > { %4366 = vmatprep.mubr.msk.f32.mxu1 %vm5120_vm0, %v5119_v0 }
 0x3e3   : > { %v1111_v13 = vpop.f32.mrf.mxu1 }
 0x3e4   : > { %v1112_v14 = vadd.f32 %v1111_v13, %v1036_v12 }
 0x3e5   : > { %v4363_v15 = vpop.f32.mrf.mxu1 }
 0x3e6   : > { %v1115_v16 = vmax.f32 %v1112_v14, 0.0 }
 0x3e8   : > { %4365 = vmatpush3.msk.msra.mxu1 %vm1121_vm10, %v1115_v16  ;;  %v5567_v16 = vld [vmem:[#allocation14] sm:$0xff] }
 0x3e9   : > { %4367 = vmatmul.mubr.msk.f32.vlgmr.msra.gmra.mxu1 %vm1117_vm11, %v1116_v17  ;;  %4369 = vmatprep.subr.mxu1 %v5119_v0  ;;  %v5569_v17 = vld [vmem:[#allocation14 + $0x20] sm:$0xff] }
 0x3ea   : > { %4370 = vmatpush3.msra.mxu1 %v1215_v18  ;;  %4371 = vmatprep.mubr.msk.f32.mxu1 %vm5120_vm0, %v5119_v0  ;;  %v1914_v18 = vlaneseq }
 0x3eb   : > { %4374 = vmatprep.subr.mxu1 %v5119_v0 }
 0x3ed   : > { %4372 = vmatmul.mubr.msk.f32.vlgmr.msra.gmra.mxu1 %vm1216_vm12, %v1031_v10 }
 0x3ee   : > { %4375 = vmatpush3.msra.mxu1 %v3922_v19  ;;  %4376 = vmatprep.mubr.msk.f32.mxu1 %vm5120_vm0, %v5119_v0  ;;  %v1915_v19 = vshrl.u32 %v1914_v18, 7  ;;  %v4733_v18 = vld [vmem:[#allocation6 + $0x48] sm:$0xff]  }
 0x3ef   : > { %4379 = vmatprep.subr.mxu1 %v5119_v0 }
 0x3f1   : > { %4377 = vmatmul.mubr.msk.f32.vlgmr.msra.gmra.mxu1 %vm1216_vm12, %v1031_v10 }
 0x3f2   : > { %4381 = vmatprep.mubr.msk.f32.mxu1 %vm5120_vm0, %v5119_v0 }
 0x4a9   : > { %v1191_v20 = vpop.f32.mrf.mxu1 }
 0x4aa   : > { %v1196_v30 = vsel %vm1195_vm14, %v1191_v20, -inf }
 0x4ab   : > { %v4368_v21 = vpop.f32.mrf.mxu1  ;;  %v1197_v31 = vrot.slane %v1196_v30, 4 }
 0x4ac   : > { %v2518_v21 = vsub.s32 0, %v1915_v19 }
 0x4ad   : > { %v1285_v22 = vpop.f32.mrf.mxu1  ;;  %v1198_v32 = vmax.f32 %v1196_v30, %v1197_v31 }
 0x4af   : > { %v4373_v23 = vpop.f32.mrf.mxu1  ;;  %v1199_v33 = vrot.slane %v1198_v32, 2 }
 0x4b1   : > { %v1358_v25 = vpop.f32.mrf.mxu1  ;;  %v1200_v34 = vmax.f32 %v1198_v32, %v1199_v33 }
 0x4b2   : > { %4380 = vmatpush3.msk.msra.mxu1 %vm1041_vm8, %v1358_v25 }
 0x4b3   : > { %v4378_v26 = vpop.f32.mrf.mxu1  ;;  %4382 = vmatmul.mubr.msk.f32.vlgmr.msra.gmra.mxu1 %vm1037_vm9, %v3924_v24  ;;  %4384 = vmatprep.subr.mxu1 %v5119_v0  ;;  %v1201_v35 = vrot.slane %v1200_v34, 1  ;;  %v1924_v24 = vsub.s32 2, %v1915_v19 }
 0x4b4   : > { %4385 = vmatpush3.msk.msra.mxu1 %vm1041_vm8, %v1285_v22  ;;  %4386 = vmatprep.mubr.msk.f32.mxu1 %vm5120_vm0, %v5119_v0 }
 0x4b5   : > { %4389 = vmatprep.subr.mxu1 %v5119_v0  ;;  %v1202_v36 = vmax.f32 %v1200_v34, %v1201_v35 }
 0x4b7   : > { %4387 = vmatmul.mubr.msk.f32.vlgmr.msra.gmra.mxu1 %vm1037_vm9, %v1289_v27  ;;  %v1203_v37 = vsub.f32 %v1191_v20, %v1202_v36  ;;  %v1916_v20 = vsub.s32 1, %v1915_v19 }
 0x4b8   : > { %4390 = vmatpush3.msra.mxu1 %v3929_v28  ;;  %4391 = vmatprep.mubr.msk.f32.mxu1 %vm5120_vm0, %v5119_v0 }
 0x4b9   : > { %4394 = vmatprep.subr.mxu1 %v5119_v0  ;;  %v1204_v38 = vmul.f32 1.442695, %v1203_v37 }
 0x4bb   : > { %4392 = vmatmul.mubr.msk.f32.vlgmr.msra.gmra.mxu1 %vm1216_vm12, %v1031_v10  ;;  %4809 = vpow2.f32 %v1204_v38 }
 0x4bc   : > { %4396 = vmatprep.mubr.msk.f32.mxu1 %vm5120_vm0, %v5119_v0 }
 0x4c8   : > { %v4810_v39 = vpop.eup %4809 }
 0x4c9   : > { %v1206_v40 = vsel %vm1195_vm14, %v4810_v39, 0.0 }
 0x4ca   : > { %v1207_v42 = vrot.slane %v1206_v40, 4 }
 0x4cc   : > { %v1208_v43 = vadd.f32 %v1207_v42, %v1206_v40 }
 0x4ce   : > { %v1209_v44 = vrot.slane %v1208_v43, 2 }
 0x4d0   : > { %v1210_v46 = vadd.f32 %v1209_v44, %v1208_v43 }
 0x4d2   : > { %v1211_v47 = vrot.slane %v1210_v46, 1 }
 0x4d4   : > { %v1212_v48 = vadd.f32 %v1211_v47, %v1210_v46 }
 0x4d6   : > { %4811 = vrcp.f32 %v1212_v48 }
 0x4e3   : > { %v4812_v59 = vpop.eup %4811 }
 0x4e4   : > { %v1214_v62 = vmul.f32 %v4812_v59, %v4810_v39 }
 0x573   : > { %v1436_v49 = vpop.f32.mrf.mxu1 }
 0x575   : > { %v4383_v50 = vpop.f32.mrf.mxu1 }
 0x577   : > { %v1512_v52 = vpop.f32.mrf.mxu1 }
 0x578   : > { %v1513_v53 = vadd.f32 %v1512_v52, %v1436_v49 }
 0x579   : > { %v4388_v54 = vpop.f32.mrf.mxu1 }
 0x57b   : > { %v1584_v57 = vpop.f32.mrf.mxu1 }
 0x57c   : > { %4395 = vmatpush3.msk.msra.mxu1 %vm1041_vm8, %v1584_v57  ;;  %v5601_v57 = vld [vmem:[#allocation14 + $0x8] sm:$0xff] }
 0x57d   : > { %v4393_v60 = vpop.f32.mrf.mxu1  ;;  %4397 = vmatmul.mubr.msk.f32.vlgmr.msra.gmra.mxu1 %vm1037_vm9, %v3931_v55  ;;  %4404 = vmatprep.subr.mxu1 %v5119_v0 }
 0x57e   : > { %4405 = vmatpush3.msra.mxu1 %v1761_v58  ;;  %4406 = vmatprep.mubr.msk.f32.mxu1 %vm5120_vm0, %v5119_v0  ;;  %v4722_v60 = vld [vmem:[#allocation6 + $0x38] sm:$0xff]  }
 0x581   : > { %4407 = vmatmul.mubr.msk.f32.vlgmr.msra.gmra.mxu1 %vm1216_vm12, %v1214_v62 }
 0x582   : > { %4418 = vmatprep.mubr.msk.f32.mxu1 %vm1932_vm1, %v5567_v16 }
 0x63d   : > { %v1662_v63 = vpop.f32.mrf.mxu1 }
 0x63e   : > { %v1666_v3 = vadd.f32 %v1662_v63, %v1513_v53  ;;  %v4723_v63 = vld [vmem:[#allocation6 + $0x70] sm:$0xff]  }
 0x63f   : > { %v4398_v4 = vpop.f32.mrf.mxu1 }
 0x640   : > { %v1674_v5 = vadd.f32 %v3934_v2, %v1666_v3  ;;  %v4714_v2 = vld [vmem:[#allocation6 + $0xb0] sm:$0xff]   ;;  %v4725_v4 = vld [vmem:[#allocation6 + $0x68] sm:$0xff]  }
 0x641   : > { %v1831_v6 = vpop.f32.mrf.mxu1  ;;  %v4724_v3 = vld [vmem:[#allocation6 + $0x30] sm:$0xff]  }
 0x642   : > { %v1675_v7 = vmax.f32 %v1674_v5, 0.0  ;;  %v4715_v5 = vld [vmem:[#allocation6 + $0xa8] sm:$0xff]  }
 0x643   : > { %v4408_v8 = vpop.f32.mrf.mxu1 }
 0x644   : > { %4402 = vmatmul.mubr.msk.f32.vlgmr.msra.gmra.mxu0 %vm1677_vm15, %v1675_v7  ;;  %v4727_v7 = vld [vmem:[#allocation6 + $0x60] sm:$0xff]  }
 0x645   : > { %4410 = vmatpush3.msra.mxu0 %v1761_v58  ;;  %4411 = vmatprep.mubr.msk.f32.mxu0 %vm5120_vm0, %v5119_v0  ;;  %v5603_v58 = vld [vmem:[#allocation14 + $0x28] sm:$0xff]  ;;  %v4716_v8 = vld [vmem:[#allocation6 + $0xa0] sm:$0xff]  }
 0x704   : > { %v1751_v9 = vpop.f32.mrf.mxu0 }
 0x705   : > { %v1755_v10 = vsub.f32 0.0, %v1751_v9  ;;  %v4728_v9 = vld [vmem:[#allocation6 + $0x20] sm:$0xff]  }
 0x706   : > { %v4403_v11 = vpop.f32.mrf.mxu0 }
 0x707   : > { %v1756_v12 = vmul.f32 1.442695, %v1755_v10  ;;  %v4729_v10 = vld [vmem:[#allocation6 + $0x58] sm:$0xff]  }
 0x708   : > { %v4717_v11 = vld [vmem:[#allocation6 + $0x98] sm:$0xff]  }
 0x709   : > { %4813 = vpow2.f32 %v1756_v12  ;;  %v4730_v12 = vld [vmem:[#allocation6 + $0x18] sm:$0xff]  }
 0x716   : > { %v4814_v13 = vpop.eup %4813 }
 0x717   : > { %v1758_v14 = vadd.f32 1.0, %v4814_v13  ;;  %v4731_v13 = vld [vmem:[#allocation6 + $0x50] sm:$0xff]  }
 0x719   : > { %4815 = vrcp.f32 %v1758_v14  ;;  %v4718_v14 = vld [vmem:[#allocation6 + $0x90] sm:$0xff]  }
 0x726   : > { %v4816_v15 = vpop.eup %4815 }
 0x727   : > { %4412 = vmatmul.mubr.msk.f32.vlgmr.msra.gmra.mxu0 %vm1216_vm12, %v4816_v15  ;;  %v4732_v15 = vld [vmem:[#allocation6 + $0x10] sm:$0xff]  }
 0x728   : > { %4425 = vmatprep.mubr.msk.f32.mxu0 %vm1932_vm1, %v5569_v17 }
 0x7e7   : > { %v1904_v22 = vpop.f32.mrf.mxu0 }
 0x7e8   : > { %v1909_v23 = vrot.slane %v1904_v22, 7  ;;  %v2513_v25 = vmul.f32 %v1904_v22, %v1831_v6  ;;  %v3125_v26 = vrot.slane %v1904_v22, 1  ;;  %v4734_v22 = vld [vmem:[#allocation6 + $0x8] sm:$0xff]  }
 0x7e9   : > { %v4413_v27 = vpop.f32.mrf.mxu0 }
 0x7ea   : > { %v1911_v28 = vmul.f32 %v1909_v23, %v1831_v6  ;;  %v5575_v29 = vrot.slane %v2513_v25, %v2518_v21  ;;  %v5577_v30 = vrot.slane %v2513_v25, %v1916_v20  ;;  %v3127_v31 = vmul.f32 %v3125_v26, %v1831_v6  ;;  %v4726_v6 = vld [vmem:[#allocation6 + $0x28] sm:$0xff]   ;;  %v4736_v26 = vld [vmem:[#allocation6] sm:$0xff]  }
 0x7eb   : > { %v5581_v35 = vrot.slane %v2513_v25, %v1924_v24 }
 0x7ec   : > { %v1917_v32 = vrot.slane %v1911_v28, %v1916_v20  ;;  %v1925_v33 = vrot.slane %v1911_v28, %v1924_v24  ;;  %v2520_v34 = vmul.f32 %v5575_v29, %v5466_v41  ;;  %v2528_v36 = vmul.f32 %v5577_v30, %v5472_v51  ;;  %v4720_v24 = vld [vmem:[#allocation6 + $0x80] sm:$0xff]  }
 0x7ed   : > { %v3133_v43 = vrot.slane %v3127_v31, %v2518_v21  ;;  %v3141_v44 = vrot.slane %v3127_v31, %v1916_v20  ;;  %v2538_v48 = vmul.f32 %v5581_v35, %v5478_v61  ;;  %v2521_v19 = vmul.f32 %v5575_v29, %v5469_v45  ;;  %v4719_v21 = vld [vmem:[#allocation6 + $0x88] sm:$0xff]  }
 0x7ee   : > { %v1918_v37 = vmul.f32 %v1917_v32, %v5466_v41  ;;  %v1919_v38 = vmul.f32 %v1917_v32, %v5469_v45  ;;  %v1926_v39 = vmul.f32 %v1925_v33, %v5472_v51  ;;  %v1927_v40 = vmul.f32 %v1925_v33, %v5475_v56  ;;  %v4737_v33 = vld [vmem:[#allocation9 + $0x38] sm:$0xff]  }
 0x7ef   : > { %v2530_v42 = vadd.f32 %v2528_v36, %v2520_v34  ;;  %v3134_v49 = vmul.f32 %v3133_v43, %v5472_v51  ;;  %v3135_v50 = vmul.f32 %v3133_v43, %v5475_v56  ;;  %v3142_v41 = vmul.f32 %v3141_v44, %v5478_v61  ;;  %v4713_v51 = vld [vmem:[#allocation6 + $0xb8] sm:$0xff]   ;;  %v4739_v34 = vld [vmem:[#allocation9 + $0x28] sm:$0xff]  }
 0x7f0   : > { %v1928_v46 = vadd.f32 %v1926_v39, %v1918_v37  ;;  %v1929_v47 = vadd.f32 %v1927_v40, %v1919_v38  ;;  %v3143_v52 = vmul.f32 %v3141_v44, %v5481_v1  ;;  %v4721_v61 = vld [vmem:[#allocation6 + $0x78] sm:$0xff]   ;;  %v2529_v20 = vmul.f32 %v5577_v30, %v5475_v56  ;;  %v4735_v56 = vld [vmem:[#allocation6 + $0x40] sm:$0xff]   ;;  %v4747_v43 = vld [vmem:[#allocation6 + $0x30] sm:$0xff]  }
 0x7f1   : > { %v5595_v53 = vadd.f32 %v2538_v48, %v2530_v42  ;;  %v5597_v54 = vadd.f32 %v3142_v41, %v3134_v49  ;;  %v2539_v25 = vmul.f32 %v5581_v35, %v5481_v1  ;;  %v4738_v1 = vld [vmem:[#allocation9 + $0x30] sm:$0xff]   ;;  %v4740_v35 = vld [vmem:[#allocation9 + $0x20] sm:$0xff]   ;;  %v4741_v37 = vld [vmem:[#allocation9 + $0x18] sm:$0xff]  }
 0x7f2   : > { %4414 = vmatprep.subr.mxu1 %v1929_v47  ;;  %4421 = vmatprep.subr.mxu0 %v1929_v47  ;;  %v5599_v55 = vadd.f32 %v3143_v52, %v3135_v50  ;;  %v2099_v59 = vpack.c.bf16 %v1929_v47, %v1928_v46  ;;  %v2531_v23 = vadd.f32 %v2529_v20, %v2521_v19  ;;  %v4743_v38 = vld [vmem:[#allocation6 + $0x78] sm:$0xff]   ;;  %v4746_v42 = vld [vmem:[#allocation6 + $0x70] sm:$0xff]   ;;  %v4750_v48 = vld [vmem:[#allocation6 + $0x28] sm:$0xff]  }
 0x7f3   : > { %4415 = vmatpush3.msra.mxu1 %v1929_v47  ;;  %4422 = vmatpush3.msra.mxu0 %v1929_v47  ;;  %v4744_v39 = vld [vmem:[#allocation6 + $0x38] sm:$0xff]   ;;  %v4745_v44 = vld [vmem:[#allocation9 + $0x8] sm:$0xff]   ;;  %v4748_v47 = vld [vmem:[#allocation9] sm:$0xff]  }
 0x7f4   : > { %4416 = vmatprep.subr.mxu1 %v1928_v46  ;;  %4423 = vmatprep.subr.mxu0 %v1928_v46  ;;  %v3313_v62 = vpack.c.bf16 %v5599_v55, %v5597_v54  ;;  %v2541_v45 = vadd.f32 %v2539_v25, %v2531_v23  ;;  %v4742_v40 = vld [vmem:[#allocation9 + $0x10] sm:$0xff]   ;;  %v4751_v49 = vld [vmem:[#allocation6 + $0x60] sm:$0xff]  }
 0x7f5   : > { %4417 = vmatpush3.msra.mxu1 %v1928_v46  ;;  %4424 = vmatpush3.msra.mxu0 %v1928_v46  ;;  %v4749_v46 = vld [vmem:[#allocation6 + $0x68] sm:$0xff]   ;;  %v4753_v50 = vld [vmem:[#allocation6 + $0x20] sm:$0xff]   ;;  %v4754_v41 = vld [vmem:[#allocation6 + $0x58] sm:$0xff]  }
 0x7f6   : > { %4419 = vmatmul.mubr.msk.f32.vlgmr.msra.gmra.mxu1 %vm1932_vm1, %v5601_v57  ;;  %4426 = vmatmul.mubr.msk.f32.vlgmr.msra.gmra.mxu0 %vm1932_vm1, %v5603_v58  ;;  %v2709_v36 = vpack.c.bf16 %v2541_v45, %v5595_v53  ;;  %v4756_v52 = vld [vmem:[#allocation6 + $0x18] sm:$0xff]  }
 0x7f7   : > { %4428 = vmatprep.subr.bf16.mxu0 %v5119_v0  ;;  %2332 = vmatprep.mubr.bf16.mxu1 %v2099_v59  ;;  %v4762_v59 = vld [vmem:[#allocation6 + $0x8] sm:$0xff]  }
 0x7f8   : > { %4429 = vmatpush3.bf16.msra.mxu0 %v4713_v51  ;;  %4139 = vmatprep.subr.bf16.mxu1 %v4721_v61  ;;  %v4759_v51 = vld [vmem:[#allocation6 + $0x10] sm:$0xff]   ;;  %v4760_v61 = vld [vmem:[#allocation6 + $0x48] sm:$0xff]  }
 0x7f9   : > { %4430 = vmatprep.subr.bf16.mxu0 %v5119_v0  ;;  %4140 = vmatpush3.bf16.msra.mxu1 %v4722_v60  ;;  %v4763_v60 = vld [vmem:[#allocation6 + $0x40] sm:$0xff]  }
 0x7fa   : > { %4141 = vmatprep.subr.bf16.mxu1 %v4723_v63  ;;  %4444 = vmatprep.mubr.msk.bf16.mxu0 %vm5120_vm0, %v5119_v0  ;;  %v4765_v63 = vld [vmem:[#allocation6] sm:$0xff]  }
 0x7fc   : > { %4431 = vmatpush3.bf16.msra.mxu0 %v4714_v2 }
 0x7fd   : > { %4432 = vmatprep.subr.bf16.mxu0 %v5119_v0  ;;  %4142 = vmatpush3.bf16.msra.mxu1 %v4724_v3 }
 0x7fe   : > { %4143 = vmatprep.subr.bf16.mxu1 %v4725_v4  ;;  %v5652_v4 = vld [vmem:[#allocation8] ss:$0 sm:$0xff] }
 0x800   : > { %4433 = vmatpush3.bf16.msra.mxu0 %v4715_v5 }
 0x801   : > { %4434 = vmatprep.subr.bf16.mxu0 %v5119_v0  ;;  %4144 = vmatpush3.bf16.msra.mxu1 %v4726_v6 }
 0x802   : > { %4145 = vmatprep.subr.bf16.mxu1 %v4727_v7 }
 0x804   : > { %4435 = vmatpush3.bf16.msra.mxu0 %v4716_v8 }
 0x805   : > { %4436 = vmatprep.subr.bf16.mxu0 %v5119_v0  ;;  %4146 = vmatpush3.bf16.msra.mxu1 %v4728_v9 }
 0x806   : > { %4147 = vmatprep.subr.bf16.mxu1 %v4729_v10 }
 0x808   : > { %4437 = vmatpush3.bf16.msra.mxu0 %v4717_v11 }
 0x809   : > { %4438 = vmatprep.subr.bf16.mxu0 %v5119_v0  ;;  %4148 = vmatpush3.bf16.msra.mxu1 %v4730_v12 }
 0x80a   : > { %4149 = vmatprep.subr.bf16.mxu1 %v4731_v13 }
 0x80c   : > { %4439 = vmatpush3.bf16.msra.mxu0 %v4718_v14 }
 0x80d   : > { %4440 = vmatprep.subr.bf16.mxu0 %v5119_v0  ;;  %4150 = vmatpush3.bf16.msra.mxu1 %v4732_v15 }
 0x80e   : > { %4151 = vmatprep.subr.bf16.mxu1 %v4733_v18 }
 0x810   : > { %4441 = vmatpush3.bf16.msra.mxu0 %v4719_v21 }
 0x811   : > { %4442 = vmatprep.subr.bf16.mxu0 %v5119_v0  ;;  %4152 = vmatpush3.bf16.msra.mxu1 %v4734_v22 }
 0x812   : > { %4153 = vmatprep.subr.bf16.mxu1 %v4735_v56 }
 0x814   : > { %4443 = vmatpush3.bf16.msra.mxu0 %v4720_v24 }
 0x815   : > { %4468 = vmatprep.subr.mxu0 %v2541_v45  ;;  %4154 = vmatpush3.bf16.msra.mxu1 %v4736_v26  ;;  %v4755_v26 = vld [vmem:[#allocation6 + $0xb0] sm:$0xff]  }
 0x816   : > { %4448 = vmatprep.subr.bf16.mxu1 %v5119_v0 }
 0x8b6   : > { %v4420_v27 = vpop.f32.mrf.mxu1  ;;  %v4427_v28 = vpop.f32.mrf.mxu0 }
 0x8b8   : > { %v2005_v29 = vpop.f32.mrf.mxu1  ;;  %v2089_v30 = vpop.f32.mrf.mxu0 }
 0x8b9   : > { %v2098_v31 = vpack.c.bf16 %v4420_v27, %v2005_v29  ;;  %v2100_v32 = vpack.c.bf16 %v4427_v28, %v2089_v30  ;;  %v4758_v27 = vld [vmem:[#allocation6 + $0xa8] sm:$0xff]   ;;  %v4761_v28 = vld [vmem:[#allocation6 + $0xa0] sm:$0xff]   ;;  %v4764_v29 = vld [vmem:[#allocation6 + $0x98] sm:$0xff]  }
 0x8ba   : > { %v4766_v30 = vld [vmem:[#allocation6 + $0x90] sm:$0xff]  }
 0x8bb   : > { %2333 = vmatmul.mubr.bf16.vlgmr.msra.gmra.mxu1 %v2098_v31  ;;  %4445 = vmatmul.mubr.bf16.vlgmr.msra.gmra.mxu0 %v2100_v32  ;;  %v4767_v31 = vld [vmem:[#allocation6 + $0x88] sm:$0xff]  }
 0x8bc   : > { %4469 = vmatpush3.msra.mxu0 %v2541_v45  ;;  %4472 = vmatprep.mubr.msk.f32.mxu0 %vm1932_vm1, %v5567_v16 }
 0x8bd   : > { %4470 = vmatprep.subr.mxu0 %v5595_v53  ;;  %4449 = vmatpush3.bf16.msra.mxu1 %v4737_v33  ;;  %v4768_v33 = vld [vmem:[#allocation6 + $0x80] sm:$0xff]  }
 0x8be   : > { %4471 = vmatpush3.msra.mxu0 %v5595_v53  ;;  %4450 = vmatprep.subr.bf16.mxu1 %v5119_v0 }
 0x8bf   : > { %4475 = vmatprep.subr.mxu0 %v2541_v45  ;;  %4464 = vmatprep.mubr.msk.bf16.mxu1 %vm5120_vm0, %v5119_v0 }
 0x8c1   : > { %4451 = vmatpush3.bf16.msra.mxu1 %v4738_v1 }
 0x8c2   : > { %4452 = vmatprep.subr.bf16.mxu1 %v5119_v0 }
 0x8c3   : > { %4473 = vmatmul.mubr.msk.f32.vlgmr.msra.gmra.mxu0 %vm1932_vm1, %v5601_v57 }
 0x8c4   : > { %4476 = vmatpush3.msra.mxu0 %v2541_v45  ;;  %4479 = vmatprep.mubr.msk.f32.mxu0 %vm1932_vm1, %v5569_v17  ;;  %v4752_v45 = vld [vmem:[#allocation6 + $0xb8] sm:$0xff]  }
 0x8c5   : > { %4477 = vmatprep.subr.mxu0 %v5595_v53  ;;  %4453 = vmatpush3.bf16.msra.mxu1 %v4739_v34 }
 0x8c6   : > { %4478 = vmatpush3.msra.mxu0 %v5595_v53  ;;  %4454 = vmatprep.subr.bf16.mxu1 %v5119_v0  ;;  %v4757_v53 = vld [vmem:[#allocation6 + $0x50] sm:$0xff]  }
 0x8c7   : > { %4480 = vmatmul.mubr.msk.f32.vlgmr.msra.gmra.mxu0 %vm1932_vm1, %v5603_v58  ;;  %4187 = vmatprep.subr.bf16.mxu0 %v4743_v38  ;;  %v4777_v38 = vld [vmem:[#allocation9 + $0x8] sm:$0xff]  }
 0x8c8   : > { %2942 = vmatprep.mubr.bf16.mxu0 %v2709_v36  ;;  %4188 = vmatpush3.bf16.msra.mxu0 %v4744_v39  ;;  %v4773_v36 = vld [vmem:[#allocation9 + $0x18] sm:$0xff]   ;;  %v4781_v39 = vld [vmem:[#allocation6 + $0x68] sm:$0xff]  }
 0x8c9   : > { %4455 = vmatpush3.bf16.msra.mxu1 %v4740_v35  ;;  %4189 = vmatprep.subr.bf16.mxu0 %v4746_v42  ;;  %v4770_v35 = vld [vmem:[#allocation9 + $0x30] sm:$0xff]   ;;  %v4780_v42 = vld [vmem:[#allocation9] sm:$0xff]  }
 0x8ca   : > { %4456 = vmatprep.subr.bf16.mxu1 %v5119_v0 }
 0x8cc   : > { %4190 = vmatpush3.bf16.msra.mxu0 %v4747_v43  ;;  %v4783_v43 = vld [vmem:[#allocation6 + $0x60] sm:$0xff]  }
 0x8cd   : > { %4457 = vmatpush3.bf16.msra.mxu1 %v4741_v37  ;;  %4191 = vmatprep.subr.bf16.mxu0 %v4749_v46  ;;  %v4779_v37 = vld [vmem:[#allocation6 + $0x30] sm:$0xff]   ;;  %v4786_v46 = vld [vmem:[#allocation6 + $0x58] sm:$0xff]  }
 0x8ce   : > { %4458 = vmatprep.subr.bf16.mxu1 %v5119_v0 }
 0x8d0   : > { %4192 = vmatpush3.bf16.msra.mxu0 %v4750_v48  ;;  %v4789_v48 = vld [vmem:[#allocation6 + $0x50] sm:$0xff]  }
 0x8d1   : > { %4459 = vmatpush3.bf16.msra.mxu1 %v4742_v40  ;;  %4193 = vmatprep.subr.bf16.mxu0 %v4751_v49  ;;  %v4782_v40 = vld [vmem:[#allocation6 + $0x28] sm:$0xff]   ;;  %v4791_v49 = vld [vmem:[#allocation6 + $0x10] sm:$0xff]  }
 0x8d2   : > { %4460 = vmatprep.subr.bf16.mxu1 %v5119_v0 }
 0x8d4   : > { %4194 = vmatpush3.bf16.msra.mxu0 %v4753_v50  ;;  %v4792_v50 = vld [vmem:[#allocation6 + $0x48] sm:$0xff]  }
 0x8d5   : > { %4461 = vmatpush3.bf16.msra.mxu1 %v4745_v44  ;;  %4195 = vmatprep.subr.bf16.mxu0 %v4754_v41  ;;  %v4785_v44 = vld [vmem:[#allocation6 + $0x20] sm:$0xff]   ;;  %v4794_v41 = vld [vmem:[#allocation6 + $0x8] sm:$0xff]  }
 0x8d6   : > { %4462 = vmatprep.subr.bf16.mxu1 %v5119_v0 }
 0x8d8   : > { %4196 = vmatpush3.bf16.msra.mxu0 %v4756_v52  ;;  %v4795_v52 = vld [vmem:[#allocation6 + $0x40] sm:$0xff]  }
 0x8d9   : > { %4463 = vmatpush3.bf16.msra.mxu1 %v4748_v47  ;;  %4197 = vmatprep.subr.bf16.mxu0 %v4757_v53  ;;  %v4788_v47 = vld [vmem:[#allocation6 + $0x18] sm:$0xff]   ;;  %v4797_v53 = vld [vmem:[#allocation6] sm:$0xff]  }
 0x8da   : > { %4482 = vmatprep.subr.bf16.mxu1 %v5119_v0 }
 0x8dc   : > { %4198 = vmatpush3.bf16.msra.mxu0 %v4759_v51  ;;  %v5696_v51 = vld [vmem:[#allocation11] ss:$0 sm:$0xff] }
 0x8dd   : > { %4199 = vmatprep.subr.bf16.mxu0 %v4760_v61 }
 0x8e0   : > { %4200 = vmatpush3.bf16.msra.mxu0 %v4762_v59  ;;  %v2501_v59 = vld [vmem:[%s5400_s23] sm:$0xff] }
 0x8e1   : > { %4201 = vmatprep.subr.bf16.mxu0 %v4763_v60 }
 0x8e4   : > { %4202 = vmatpush3.bf16.msra.mxu0 %v4765_v63 }
 0x8e5   : > { %4502 = vmatprep.subr.bf16.mxu0 %v5119_v0 }
 0x97b   : > { %v4155_v2 = vpop.f32.mrf.mxu1  ;;  %v2375_v3 = vpop.f32.mrf.mxu0 }
 0x97d   : > { %v4156_v5 = vpop.f32.mrf.mxu1  ;;  %v4446_v6 = vpop.f32.mrf.mxu0 }
 0x97e   : > { %v4157_v7 = vadd.f32 %v4156_v5, %v4155_v2  ;;  %v2502_v5 = vld [vmem:[%s5400_s23 + $0x8] sm:$0xff] }
 0x97f   : > { %v4158_v8 = vpop.f32.mrf.mxu1  ;;  %v2378_v9 = vpop.f32.mrf.mxu0 }
 0x980   : > { %v2335_v10 = vadd.f32 %v4157_v7, %v5652_v4 }
 0x981   : > { %v4159_v11 = vpop.f32.mrf.mxu1  ;;  %v4447_v12 = vpop.f32.mrf.mxu0 }
 0x982   : > { %v2376_v13 = vadd.f32 %v2375_v3, %v2335_v10  ;;  %v4160_v14 = vadd.f32 %v4159_v11, %v4158_v8 }
 0x983   : > { %v4474_v15 = vpop.f32.mrf.mxu0 }
 0x984   : > { %v2338_v18 = vadd.f32 %v4160_v14, %v5652_v4  ;;  %v2384_v20 = vmul.f32 0.01, %v2376_v13  ;;  %vm2382_vm2 = vcmp.ge.f32.partialorder %v2376_v13, 0.0 }
 0x985   : > { %v2616_v19 = vpop.f32.mrf.mxu0 }
 0x986   : > { %v2379_v21 = vadd.f32 %v2378_v9, %v2338_v18  ;;  %v2708_v22 = vpack.c.bf16 %v4474_v15, %v2616_v19  ;;  %v2386_v24 = vsel %vm2382_vm2, %v2376_v13, %v2384_v20 }
 0x987   : > { %v4481_v32 = vpop.f32.mrf.mxu0 }
 0x988   : > { %vm2383_vm3 = vcmp.ge.f32.partialorder %v2379_v21, 0.0  ;;  %v2385_v23 = vmul.f32 0.01, %v2379_v21  ;;  %2943 = vmatmul.mubr.bf16.vlgmr.msra.gmra.mxu0 %v2708_v22 }
 0x989   : > { %4518 = vmatprep.mubr.msk.bf16.mxu0 %vm5120_vm0, %v5119_v0  ;;  %v2699_v1 = vpop.f32.mrf.mxu0 }
 0x98a   : > { %v2387_v25 = vsel %vm2383_vm3, %v2379_v21, %v2385_v23  ;;  %v2710_v34 = vpack.c.bf16 %v4481_v32, %v2699_v1  ;;  %v4784_v32 = vld [vmem:[#allocation6 + $0xb8] sm:$0xff]  }
 0x98b   : > { %v2388_v56 = vpack.c.bf16 %v2387_v25, %v2386_v24 }
 0x98d   : > { %4465 = vmatmul.mubr.bf16.vlgmr.msra.gmra.mxu1 %v2388_v56 }
 0x98e   : > { %4483 = vmatpush3.bf16.msra.mxu1 %v4752_v45  ;;  %4498 = vmatprep.mubr.msk.bf16.mxu1 %vm5120_vm0, %v5119_v0 }
 0x98f   : > { %4484 = vmatprep.subr.bf16.mxu1 %v5119_v0 }
 0x992   : > { %4485 = vmatpush3.bf16.msra.mxu1 %v4755_v26 }
 0x993   : > { %4486 = vmatprep.subr.bf16.mxu1 %v5119_v0 }
 0x996   : > { %4487 = vmatpush3.bf16.msra.mxu1 %v4758_v27 }
 0x997   : > { %4488 = vmatprep.subr.bf16.mxu1 %v5119_v0 }
 0x99a   : > { %4489 = vmatpush3.bf16.msra.mxu1 %v4761_v28 }
 0x99b   : > { %4490 = vmatprep.subr.bf16.mxu1 %v5119_v0 }
 0x99e   : > { %4491 = vmatpush3.bf16.msra.mxu1 %v4764_v29 }
 0x99f   : > { %4492 = vmatprep.subr.bf16.mxu1 %v5119_v0 }
 0x9a2   : > { %4493 = vmatpush3.bf16.msra.mxu1 %v4766_v30 }
 0x9a3   : > { %4494 = vmatprep.subr.bf16.mxu1 %v5119_v0 }
 0x9a6   : > { %4495 = vmatpush3.bf16.msra.mxu1 %v4767_v31 }
 0x9a7   : > { %4496 = vmatprep.subr.bf16.mxu1 %v5119_v0 }
 0x9aa   : > { %4497 = vmatpush3.bf16.msra.mxu1 %v4768_v33 }
 0x9ab   : > { %4522 = vmatprep.subr.mxu1 %v5599_v55 }
 0x9ad   : > { %4499 = vmatmul.mubr.bf16.vlgmr.msra.gmra.mxu1 %v2710_v34 }
 0x9ae   : > { %4523 = vmatpush3.msra.mxu1 %v5599_v55  ;;  %4526 = vmatprep.mubr.msk.f32.mxu1 %vm1932_vm1, %v5567_v16  ;;  %v4769_v16 = vld [vmem:[#allocation9 + $0x38] sm:$0xff]  }
 0x9af   : > { %4524 = vmatprep.subr.mxu1 %v5597_v54  ;;  %4503 = vmatpush3.bf16.msra.mxu0 %v4769_v16  ;;  %v4787_v16 = vld [vmem:[#allocation6 + $0xb0] sm:$0xff]  }
 0x9b0   : > { %4525 = vmatpush3.msra.mxu1 %v5597_v54  ;;  %4504 = vmatprep.subr.bf16.mxu0 %v5119_v0 }
 0x9b1   : > { %4529 = vmatprep.subr.mxu1 %v5599_v55 }
 0x9b3   : > { %4505 = vmatpush3.bf16.msra.mxu0 %v4770_v35  ;;  %v4790_v35 = vld [vmem:[#allocation6 + $0xa8] sm:$0xff]  }
 0x9b4   : > { %4506 = vmatprep.subr.bf16.mxu0 %v5119_v0 }
 0x9b5   : > { %4527 = vmatmul.mubr.msk.f32.vlgmr.msra.gmra.mxu1 %vm1932_vm1, %v5601_v57  ;;  %v4771_v57 = vld [vmem:[#allocation9 + $0x28] sm:$0xff]  }
 0x9b6   : > { %4530 = vmatpush3.msra.mxu1 %v5599_v55  ;;  %4533 = vmatprep.mubr.msk.f32.mxu1 %vm1932_vm1, %v5569_v17  ;;  %v4772_v17 = vld [vmem:[#allocation9 + $0x20] sm:$0xff]   ;;  %v4774_v55 = vld [vmem:[#allocation9 + $0x10] sm:$0xff]  }
 0x9b7   : > { %4531 = vmatprep.subr.mxu1 %v5597_v54  ;;  %4507 = vmatpush3.bf16.msra.mxu0 %v4771_v57  ;;  %v4793_v57 = vld [vmem:[#allocation6 + $0xa0] sm:$0xff]  }
 0x9b8   : > { %4532 = vmatpush3.msra.mxu1 %v5597_v54  ;;  %4508 = vmatprep.subr.bf16.mxu0 %v5119_v0  ;;  %v4776_v54 = vld [vmem:[#allocation6 + $0x38] sm:$0xff]  }
 0x9b9   : > { %4534 = vmatmul.mubr.msk.f32.vlgmr.msra.gmra.mxu1 %vm1932_vm1, %v5603_v58  ;;  %v4775_v58 = vld [vmem:[#allocation6 + $0x78] sm:$0xff]  }
 0x9ba   : > { %3546 = vmatprep.mubr.bf16.mxu1 %v3313_v62  ;;  %4235 = vmatprep.subr.bf16.mxu1 %v4775_v58  ;;  %v4778_v62 = vld [vmem:[#allocation6 + $0x70] sm:$0xff]   ;;  %v4799_v58 = vld [vmem:[#allocation6 + $0x88] sm:$0xff]  }
 0x9bb   : > { %4509 = vmatpush3.bf16.msra.mxu0 %v4772_v17  ;;  %4236 = vmatpush3.bf16.msra.mxu1 %v4776_v54  ;;  %v4796_v17 = vld [vmem:[#allocation6 + $0x98] sm:$0xff]  }
 0x9bc   : > { %4510 = vmatprep.subr.bf16.mxu0 %v5119_v0  ;;  %4237 = vmatprep.subr.bf16.mxu1 %v4778_v62 }
 0x9bf   : > { %4511 = vmatpush3.bf16.msra.mxu0 %v4773_v36  ;;  %4238 = vmatpush3.bf16.msra.mxu1 %v4779_v37  ;;  %v4798_v36 = vld [vmem:[#allocation6 + $0x90] sm:$0xff]  }
 0x9c0   : > { %4512 = vmatprep.subr.bf16.mxu0 %v5119_v0  ;;  %4239 = vmatprep.subr.bf16.mxu1 %v4781_v39  ;;  %v4802_v39 = vld [vmem:[#allocation9 + $0x30] sm:$0xff]  }
 0x9c3   : > { %4513 = vmatpush3.bf16.msra.mxu0 %v4774_v55  ;;  %4240 = vmatpush3.bf16.msra.mxu1 %v4782_v40  ;;  %v4800_v55 = vld [vmem:[#allocation6 + $0x80] sm:$0xff]   ;;  %v4803_v40 = vld [vmem:[#allocation9 + $0x28] sm:$0xff]  }
 0x9c4   : > { %4514 = vmatprep.subr.bf16.mxu0 %v5119_v0  ;;  %4241 = vmatprep.subr.bf16.mxu1 %v4783_v43  ;;  %v4805_v43 = vld [vmem:[#allocation9 + $0x18] sm:$0xff]  }
 0x9c7   : > { %4515 = vmatpush3.bf16.msra.mxu0 %v4777_v38  ;;  %4242 = vmatpush3.bf16.msra.mxu1 %v4785_v44  ;;  %v4801_v38 = vld [vmem:[#allocation9 + $0x38] sm:$0xff]   ;;  %v4806_v44 = vld [vmem:[#allocation9 + $0x10] sm:$0xff]  }
 0x9c8   : > { %4516 = vmatprep.subr.bf16.mxu0 %v5119_v0  ;;  %4243 = vmatprep.subr.bf16.mxu1 %v4786_v46  ;;  %v4807_v46 = vld [vmem:[#allocation9 + $0x8] sm:$0xff]  }
 0x9cb   : > { %4517 = vmatpush3.bf16.msra.mxu0 %v4780_v42  ;;  %4244 = vmatpush3.bf16.msra.mxu1 %v4788_v47  ;;  %v4804_v42 = vld [vmem:[#allocation9 + $0x20] sm:$0xff]  }
 0x9cc   : > { %4536 = vmatprep.subr.bf16.mxu0 %v5119_v0  ;;  %4245 = vmatprep.subr.bf16.mxu1 %v4789_v48  ;;  %v4808_v47 = vld [vmem:[#allocation9] sm:$0xff]  }
 0x9cf   : > { %4246 = vmatpush3.bf16.msra.mxu1 %v4791_v49  ;;  %v4015_v49 = vld [vmem:[%s5400_s23 + $0x10] sm:$0xff] }
 0x9d0   : > { %4247 = vmatprep.subr.bf16.mxu1 %v4792_v50 }
 0x9d3   : > { %4248 = vmatpush3.bf16.msra.mxu1 %v4794_v41 }
 0x9d4   : > { %4249 = vmatprep.subr.bf16.mxu1 %v4795_v52 }
 0x9d7   : > { %4250 = vmatpush3.bf16.msra.mxu1 %v4797_v53 }
 0x9d8   : > { %4556 = vmatprep.subr.bf16.mxu1 %v5119_v0 }
 0xa48   : > { %v4203_v13 = vpop.f32.mrf.mxu0 }
 0xa4a   : > { %v4204_v14 = vpop.f32.mrf.mxu0 }
 0xa4b   : > { %v4205_v18 = vadd.f32 %v4204_v14, %v4203_v13 }
 0xa4c   : > { %v4206_v15 = vpop.f32.mrf.mxu0 }
 0xa4d   : > { %v2494_v61 = vpop.f32.mrf.mxu1  ;;  %v2945_v21 = vadd.f32 %v4205_v18, %v5652_v4 }
 0xa4e   : > { %v2495_v60 = vadd.f32 %v5696_v51, %v2494_v61  ;;  %v4207_v19 = vpop.f32.mrf.mxu0  ;;  %v4016_v61 = vld [vmem:[%s5400_s23 + $0x18] sm:$0xff] }
 0xa4f   : > { %v4466_v63 = vpop.f32.mrf.mxu1  ;;  %v4208_v20 = vadd.f32 %v4207_v19, %v4206_v15 }
 0xa50   : > { %v2503_v2 = vadd.f32 %v2501_v59, %v2495_v60 }
 0xa51   : > { %v2497_v3 = vpop.f32.mrf.mxu1  ;;  %v2948_v25 = vadd.f32 %v4208_v20, %v5652_v4 }
 0xa52   : > { %vm2505_vm4 = vcmp.ge.f32.partialorder %v2503_v2, 0.0  ;;  %v2507_v6 = vmul.f32 0.01, %v2503_v2  ;;  %v2498_v7 = vadd.f32 %v5696_v51, %v2497_v3 }
 0xa53   : > { %v4467_v8 = vpop.f32.mrf.mxu1 }
 0xa54   : > { %v2509_v9 = vsel %vm2505_vm4, %v2503_v2, %v2507_v6  ;;  %v2504_v10 = vadd.f32 %v2502_v5, %v2498_v7 }
 0xa55   : > { %2511 = vst [vmem:[%s5704_s1] sm:$0xff] %v2509_v9 }
 0xa56   : > { %vm2506_vm5 = vcmp.ge.f32.partialorder %v2504_v10, 0.0  ;;  %v2508_v11 = vmul.f32 0.01, %v2504_v10 }
 0xa58   : > { %v2510_v12 = vsel %vm2506_vm5, %v2504_v10, %v2508_v11 }
 0xa59   : > { %2512 = vst [vmem:[%s5704_s1 + $0x8] sm:$0xff] %v2510_v12 }
 0xa6d   : > { %v2985_v22 = vpop.f32.mrf.mxu1 }
 0xa6e   : > { %v2986_v23 = vadd.f32 %v2985_v22, %v2945_v21 }
 0xa6f   : > { %v4500_v24 = vpop.f32.mrf.mxu1 }
 0xa70   : > { %v2994_v56 = vmul.f32 0.01, %v2986_v23  ;;  %vm2992_vm6 = vcmp.ge.f32.partialorder %v2986_v23, 0.0 }
 0xa71   : > { %v2988_v45 = vpop.f32.mrf.mxu1 }
 0xa72   : > { %v2989_v26 = vadd.f32 %v2988_v45, %v2948_v25  ;;  %v2996_v30 = vsel %vm2992_vm6, %v2986_v23, %v2994_v56 }
 0xa73   : > { %v4501_v27 = vpop.f32.mrf.mxu1 }
 0xa74   : > { %vm2993_vm7 = vcmp.ge.f32.partialorder %v2989_v26, 0.0  ;;  %v2995_v28 = vmul.f32 0.01, %v2989_v26 }
 0xa75   : > { %v4528_v29 = vpop.f32.mrf.mxu1 }
 0xa76   : > { %v2997_v31 = vsel %vm2993_vm7, %v2989_v26, %v2995_v28  ;;  %v4057_v26 = vld [vmem:[%s5400_s23 + $0x20] sm:$0xff] }
 0xa77   : > { %v2998_v33 = vpack.c.bf16 %v2997_v31, %v2996_v30  ;;  %v3220_v1 = vpop.f32.mrf.mxu1  ;;  %v4058_v30 = vld [vmem:[%s5400_s23 + $0x28] sm:$0xff] }
 0xa78   : > { %v3312_v34 = vpack.c.bf16 %v4528_v29, %v3220_v1 }
 0xa79   : > { %4519 = vmatmul.mubr.bf16.vlgmr.msra.gmra.mxu0 %v2998_v33  ;;  %v4535_v54 = vpop.f32.mrf.mxu1 }
 0xa7a   : > { %4537 = vmatpush3.bf16.msra.mxu0 %v4784_v32  ;;  %3547 = vmatmul.mubr.bf16.vlgmr.msra.gmra.mxu1 %v3312_v34 }
 0xa7b   : > { %4538 = vmatprep.subr.bf16.mxu0 %v5119_v0  ;;  %4552 = vmatprep.mubr.msk.bf16.mxu0 %vm5120_vm0, %v5119_v0  ;;  %v3303_v62 = vpop.f32.mrf.mxu1 }
 0xa7c   : > { %4572 = vmatprep.mubr.msk.bf16.mxu1 %vm5120_vm0, %v5119_v0  ;;  %v3314_v37 = vpack.c.bf16 %v4535_v54, %v3303_v62  ;;  %4557 = vmatpush3.bf16.msra.mxu1 %v4801_v38 }
 0xa7d   : > { %4558 = vmatprep.subr.bf16.mxu1 %v5119_v0 }
 0xa7e   : > { %4539 = vmatpush3.bf16.msra.mxu0 %v4787_v16 }
 0xa7f   : > { %4540 = vmatprep.subr.bf16.mxu0 %v5119_v0 }
 0xa80   : > { %4559 = vmatpush3.bf16.msra.mxu1 %v4802_v39 }
 0xa81   : > { %4560 = vmatprep.subr.bf16.mxu1 %v5119_v0 }
 0xa82   : > { %4541 = vmatpush3.bf16.msra.mxu0 %v4790_v35 }
 0xa83   : > { %4542 = vmatprep.subr.bf16.mxu0 %v5119_v0 }
 0xa84   : > { %4561 = vmatpush3.bf16.msra.mxu1 %v4803_v40 }
 0xa85   : > { %4562 = vmatprep.subr.bf16.mxu1 %v5119_v0 }
 0xa86   : > { %4543 = vmatpush3.bf16.msra.mxu0 %v4793_v57 }
 0xa87   : > { %4544 = vmatprep.subr.bf16.mxu0 %v5119_v0 }
 0xa88   : > { %4563 = vmatpush3.bf16.msra.mxu1 %v4804_v42 }
 0xa89   : > { %4564 = vmatprep.subr.bf16.mxu1 %v5119_v0 }
 0xa8a   : > { %4545 = vmatpush3.bf16.msra.mxu0 %v4796_v17 }
 0xa8b   : > { %4546 = vmatprep.subr.bf16.mxu0 %v5119_v0 }
 0xa8c   : > { %4565 = vmatpush3.bf16.msra.mxu1 %v4805_v43 }
 0xa8d   : > { %4566 = vmatprep.subr.bf16.mxu1 %v5119_v0 }
 0xa8e   : > { %4547 = vmatpush3.bf16.msra.mxu0 %v4798_v36 }
 0xa8f   : > { %4548 = vmatprep.subr.bf16.mxu0 %v5119_v0 }
 0xa90   : > { %4567 = vmatpush3.bf16.msra.mxu1 %v4806_v44 }
 0xa91   : > { %4568 = vmatprep.subr.bf16.mxu1 %v5119_v0 }
 0xa92   : > { %4549 = vmatpush3.bf16.msra.mxu0 %v4799_v58 }
 0xa93   : > { %4550 = vmatprep.subr.bf16.mxu0 %v5119_v0 }
 0xa94   : > { %4569 = vmatpush3.bf16.msra.mxu1 %v4807_v46 }
 0xa95   : > { %4570 = vmatprep.subr.bf16.mxu1 %v5119_v0 }
 0xa96   : > { %4551 = vmatpush3.bf16.msra.mxu0 %v4800_v55 }
 0xa98   : > { %4571 = vmatpush3.bf16.msra.mxu1 %v4808_v47 }
 0xa99   : > { %4553 = vmatmul.mubr.bf16.vlgmr.msra.gmra.mxu0 %v3314_v37 }
 0xb39   : > { %v3104_v48 = vpop.f32.mrf.mxu0 }
 0xb3a   : > { %v3105_v50 = vadd.f32 %v5696_v51, %v3104_v48  ;;  %v4251_v6 = vpop.f32.mrf.mxu1 }
 0xb3b   : > { %v4520_v41 = vpop.f32.mrf.mxu0 }
 0xb3c   : > { %v3114_v52 = vadd.f32 %v4015_v49, %v3105_v50  ;;  %v4252_v7 = vpop.f32.mrf.mxu1 }
 0xb3d   : > { %v3107_v53 = vpop.f32.mrf.mxu0  ;;  %v4253_v9 = vadd.f32 %v4252_v7, %v4251_v6 }
 0xb3e   : > { %vm3116_vm0 = vcmp.ge.f32.partialorder %v3114_v52, 0.0  ;;  %v3118_v59 = vmul.f32 0.01, %v3114_v52  ;;  %v3108_v60 = vadd.f32 %v5696_v51, %v3107_v53  ;;  %v4254_v8 = vpop.f32.mrf.mxu1 }
 0xb3f   : > { %v4521_v63 = vpop.f32.mrf.mxu0  ;;  %v3549_v12 = vadd.f32 %v4253_v9, %v5652_v4 }
 0xb40   : > { %v3120_v2 = vsel %vm3116_vm0, %v3114_v52, %v3118_v59  ;;  %v3115_v3 = vadd.f32 %v4016_v61, %v3108_v60  ;;  %v4255_v10 = vpop.f32.mrf.mxu1 }
 0xb41   : > { %4017 = vst [vmem:[%s5704_s1 + $0x10] sm:$0xff] %v3120_v2  ;;  %v4256_v11 = vadd.f32 %v4255_v10, %v4254_v8 }
 0xb42   : > { %vm3117_vm8 = vcmp.ge.f32.partialorder %v3115_v3, 0.0  ;;  %v3119_v0 = vmul.f32 0.01, %v3115_v3 }
 0xb43   : > { %v3552_v18 = vadd.f32 %v4256_v11, %v5652_v4 }
 0xb44   : > { %v3121_v5 = vsel %vm3117_vm8, %v3115_v3, %v3119_v0 }
 0xb45   : > { %4018 = vst [vmem:[%s5704_s1 + $0x18] sm:$0xff] %v3121_v5 }
 0xb59   : > { %v3589_v13 = vpop.f32.mrf.mxu0 }
 0xb5a   : > { %v3590_v14 = vadd.f32 %v3589_v13, %v3549_v12 }
 0xb5b   : > { %v4554_v15 = vpop.f32.mrf.mxu0 }
 0xb5c   : > { %v3598_v20 = vmul.f32 0.01, %v3590_v14  ;;  %vm3596_vm9 = vcmp.ge.f32.partialorder %v3590_v14, 0.0 }
 0xb5d   : > { %v3592_v19 = vpop.f32.mrf.mxu0 }
 0xb5e   : > { %v3593_v21 = vadd.f32 %v3592_v19, %v3552_v18  ;;  %v3600_v24 = vsel %vm3596_vm9, %v3590_v14, %v3598_v20 }
 0xb5f   : > { %v4555_v22 = vpop.f32.mrf.mxu0 }
 0xb60   : > { %vm3597_vm10 = vcmp.ge.f32.partialorder %v3593_v21, 0.0  ;;  %v3599_v23 = vmul.f32 0.01, %v3593_v21 }
 0xb62   : > { %v3601_v25 = vsel %vm3597_vm10, %v3593_v21, %v3599_v23 }
 0xb63   : > { %v3602_v45 = vpack.c.bf16 %v3601_v25, %v3600_v24 }
 0xb65   : > { %4573 = vmatmul.mubr.bf16.vlgmr.msra.gmra.mxu1 %v3602_v45 }
 0xc25   : > { %v3708_v56 = vpop.f32.mrf.mxu1 }
 0xc26   : > { %v3709_v27 = vadd.f32 %v5696_v51, %v3708_v56 }
 0xc27   : > { %v4574_v4 = vpop.f32.mrf.mxu1 }
 0xc28   : > { %v3718_v28 = vadd.f32 %v4057_v26, %v3709_v27 }
 0xc29   : > { %v3711_v29 = vpop.f32.mrf.mxu1 }
 0xc2a   : > { %vm3720_vm11 = vcmp.ge.f32.partialorder %v3718_v28, 0.0  ;;  %v3722_v31 = vmul.f32 0.01, %v3718_v28  ;;  %v3712_v32 = vadd.f32 %v5696_v51, %v3711_v29 }
 0xc2b   : > { %v4575_v33 = vpop.f32.mrf.mxu1 }
 0xc2c   : > { %v3724_v1 = vsel %vm3720_vm11, %v3718_v28, %v3722_v31  ;;  %v3719_v34 = vadd.f32 %v4058_v30, %v3712_v32 }
 0xc2d   : > { %4059 = vst [vmem:[%s5704_s1 + $0x20] sm:$0xff] %v3724_v1 }
 0xc2e   : > { %vm3721_vm12 = vcmp.ge.f32.partialorder %v3719_v34, 0.0  ;;  %v3723_v16 = vmul.f32 0.01, %v3719_v34 }
 0xc30   : > { %v3725_v51 = vsel %vm3721_vm12, %v3719_v34, %v3723_v16 }
 0xc31   : > { %4060 = vst [vmem:[%s5704_s1 + $0x28] sm:$0xff] %v3725_v51 }
 0xc32   : > { %5038 = shalt.err (!%p5035_p1)
}
 0xc33   : > { %s5039_s18 = scalar_lea.hbm %s5748_s27, 768  ;;  %s5043_s23 = scalar_lea.hbm %s5854_s26, 1536 }
 0xc34   : > { %p5040_p12 = scmp.ne.s32.totalorder %s5748_s27, %s5039_s18  ;;  %p5044_p2 = scmp.lt.s32.totalorder %s5748_s27, %s5854_s26 }
 0xc35   : > { %p5045_p4 = scmp.lt.s32.totalorder %s5043_s23, %s5039_s18 }
 0xc36   : > { %p5041_p10 = pnand %p5040_p12, %p5855_p9 }
 0xc37   : > { %p5046_p7 = por %p5045_p4, %p5044_p2 }
 0xc38   : > { %p5042_p3 = pneg %p5041_p10 }
 0xc3a   : > { %p5047_p8 = pnand %p5046_p7, %p5042_p3 }
 0xc3c   : > { %5050 = shalt.err (!%p5047_p8)
}
 0xc3d   : > { %s5122_s0 = smov 128   ;;  %s5123_s29 = smov 8  }
 0xc3e   : > { %4609 = dma.vmem_to_hbm [thread:$0]  (%p5855_p9), %s5743_s21, 768, %s5748_s27, %s5753_s30, %s5122_s0, %s5122_s0, %s5123_s29  }
 0xc3f PF: > { %s5856_s20 = sld [smem:[#allocation26_spill]] }
 0xc40   : > { %s5857_s1 = sld [smem:[#allocation24_spill]] }
 0xc41   : > { %s5858_s24 = sld [smem:[#allocation29_spill]] }
 0xc45   : > { %p4656_p11 = scmp.ge.s32.totalorder %s5856_s20, 2 }
 0xc46   : > { %s3759_s3 = sand.u32 1, %s5857_s1  }
 0xc47   : > { %p5859_p5 = scmp.ne.s32.totalorder %s5858_s24, 0  ;;  %s3760_s18 = scalar_lea.sflag [#allocation5], %s3759_s3 }
 0xc49   : > { %p4637_p13 = pnand %p4656_p11, %p5859_p5 }
 0xc4b   : > { %p4638_p6 = pneg %p4637_p13 }
 0xc4d   : > { %5088 = dma.done.wait (%p4638_p6), %s3760_s18, 768  }
 0xc4e   : > { %5090 = vsyncadd (%p4638_p6), %s3760_s18, 4294966528  ;;  %s5860_s30 = sld [smem:[#allocation27_spill]]  ;;  %s5863_s27 = smov %s5097_s28 }
 0xc4f   : > { %s5861_s23 = sld [smem:[#allocation25_spill]] }
 0xc50   : > { %s5862_s29 = sld [smem:[#allocation28_spill]] }
 0xc54   : > { %p33_p0 = scmp.ge.s32.totalorder %s5860_s30, 4  }
 0xc55   : > { %s5864_s28 = smov %s5861_s23 }
 0xc56   :  { %35 = sbr.rel (!%p33_p0) target bundleno = 14 (0xe), region = 169 }
 0xc5b   :  { %3765 = vsyncpa [#allocation4], 1 }
 0xc5c   :  { %3767 = vsyncpa [#allocation4 + $0x1], 1 }
 0xc5d   :  { %3768 = vsyncpa [#allocation7], 1 }
 0xc5e   :  { %3769 = vsyncpa [#allocation10], 1 }
 0xc5f   :  { %3770 = vsyncpa [#allocation13], 1 }
 0xc60   :  { %3771 = vsyncpa [#allocation16], 1 }
 0xc61   :  { %3772 = vsyncpa [#allocation5], 1 }
 0xc62   :  { %3774 = vsyncpa [#allocation5 + $0x1], 1 }

</bundles_post_ra>
